<compile_context>
chip_gen: v7x
topology: tpu7x:2x2x1
jax: 0.10.0
libtpu: 0.0.40
codegen_flags: <defaults>
</compile_context>

<pallas_src>
import functools
import math

import jax
import jax.numpy as jnp
from jax import lax
from jax.experimental import pallas as pl
from jax.experimental.pallas import tpu as pltpu


# ----------------------------------------------------------------------------
# Model configuration ("nano"-like, scaled down for this synthetic run)
# ----------------------------------------------------------------------------
VOCAB = 16
PAD_IDX = 0
LM_EMBED_DIM = 32
LM_NUM_HEADS = 4
LM_NUM_LAYERS = 2
HEAD_EMBED_DIM = 32
HEAD_NUM_BLOCKS = 6
LN_EPS = 1e-5


# ----------------------------------------------------------------------------
# Fused transformer block kernel (one pallas_call per layer, grid over batch)
# ----------------------------------------------------------------------------

def _transformer_block_kernel(x_ref, kb_ref,
                              ln1g_ref, ln1b_ref, wqkv_ref, bqkv_ref,
                              wo_ref, bo_ref, ln2g_ref, ln2b_ref,
                              w1_ref, b1_ref, w2_ref, b2_ref,
                              o_ref, *, num_heads, head_dim, eps):
    x = x_ref[0]                    # (L, D) f32
    bias = kb_ref[0]                # (1, L) additive key-padding bias
    D = num_heads * head_dim
    scale = 1.0 / math.sqrt(head_dim)

    # ---- pre-LN 1 ----
    mu = jnp.mean(x, axis=-1, keepdims=True)
    var = jnp.mean((x - mu) ** 2, axis=-1, keepdims=True)
    h = (x - mu) * lax.rsqrt(var + eps) * ln1g_ref[...] + ln1b_ref[...]

    # ---- fused QKV projection: (L, 3D), bf16 MXU / f32 accumulate ----
    qkv = jnp.dot(h.astype(jnp.bfloat16), wqkv_ref[...],
                  preferred_element_type=jnp.float32) + bqkv_ref[...]

    # ---- multi-head attention, all heads in this invocation (static unroll) ----
    head_outs = []
    for hh in range(num_heads):
        q = qkv[:, hh * head_dim:(hh + 1) * head_dim]
        k = qkv[:, D + hh * head_dim:D + (hh + 1) * head_dim]
        v = qkv[:, 2 * D + hh * head_dim:2 * D + (hh + 1) * head_dim]
        s = lax.dot_general(q, k, (((1,), (1,)), ((), ())),
                            preferred_element_type=jnp.float32) * scale + bias
        m = jnp.max(s, axis=-1, keepdims=True)
        p = jnp.exp(s - m)
        p = p * pl.reciprocal(jnp.sum(p, axis=-1, keepdims=True), approx=True)
        head_outs.append(jnp.dot(p, v, preferred_element_type=jnp.float32))
    attn = jnp.concatenate(head_outs, axis=-1)           # (L, D)

    x = x + jnp.dot(attn.astype(jnp.bfloat16), wo_ref[...],
                    preferred_element_type=jnp.float32) + bo_ref[...]

    # ---- pre-LN 2 + GELU MLP ----
    mu2 = jnp.mean(x, axis=-1, keepdims=True)
    var2 = jnp.mean((x - mu2) ** 2, axis=-1, keepdims=True)
    h2 = (x - mu2) * lax.rsqrt(var2 + eps) * ln2g_ref[...] + ln2b_ref[...]
    m1 = jnp.dot(h2.astype(jnp.bfloat16), w1_ref[...],
                 preferred_element_type=jnp.float32) + b1_ref[...]
    m1 = jax.nn.gelu(m1)
    x = x + jnp.dot(m1.astype(jnp.bfloat16), w2_ref[...],
                    preferred_element_type=jnp.float32) + b2_ref[...]

    o_ref[0] = x


def _wspec2d(shape):
    # weight block: full array, constant index map -> DMA'd once, stays in VMEM
    return pl.BlockSpec(shape, lambda b: (0, 0))


def transformer_block(p, x, key_bias, *, num_heads):
    B, L, D = x.shape
    head_dim = D // num_heads
    return pl.pallas_call(
        functools.partial(_transformer_block_kernel,
                          num_heads=num_heads, head_dim=head_dim, eps=LN_EPS),
        out_shape=jax.ShapeDtypeStruct((B, L, D), jnp.float32),
        grid=(B,),
        in_specs=[
            pl.BlockSpec((1, L, D), lambda b: (b, 0, 0)),   # x
            pl.BlockSpec((1, 1, L), lambda b: (b, 0, 0)),   # key-padding bias
            _wspec2d((1, D)), _wspec2d((1, D)),             # ln1 g, b
            _wspec2d((D, 3 * D)), _wspec2d((1, 3 * D)),     # wqkv, bqkv
            _wspec2d((D, D)), _wspec2d((1, D)),             # wo, bo
            _wspec2d((1, D)), _wspec2d((1, D)),             # ln2 g, b
            _wspec2d((D, 4 * D)), _wspec2d((1, 4 * D)),     # w1, b1
            _wspec2d((4 * D, D)), _wspec2d((1, D)),         # w2, b2
        ],
        out_specs=pl.BlockSpec((1, L, D), lambda b: (b, 0, 0)),
        compiler_params=pltpu.CompilerParams(
            dimension_semantics=("parallel",)),
    )(x, key_bias,
      p["ln1_g"], p["ln1_b"], p["wqkv"], p["bqkv"],
      p["wo"], p["bo"], p["ln2_g"], p["ln2_b"],
      p["w1"], p["b1"], p["w2"], p["b2"])


# ----------------------------------------------------------------------------
# Fused prediction-head kernel (final LN + mask + linear_in + 6 conv-res blocks
# + masked mean pool + linear_out + inverse scaler) -- single pallas_call
# ----------------------------------------------------------------------------

def _head_kernel(x_ref, valid_ref, sprev_ref, snext_ref, pool_ref,
                 lnfg_ref, lnfb_ref, win_ref, bin_ref,
                 convw_ref, convb_ref, wout_ref, bout_ref,
                 scale_ref, mean_ref,
                 pred_ref, unsc_ref, *, num_blocks, eps):
    x = x_ref[...]                       # (B*L, D) f32
    valid = valid_ref[...]               # (B*L, 1) f32 (1 = real token, 0 = pad)

    # ---- final LM layernorm ----
    mu = jnp.mean(x, axis=-1, keepdims=True)
    var = jnp.mean((x - mu) ** 2, axis=-1, keepdims=True)
    x = (x - mu) * lax.rsqrt(var + eps) * lnfg_ref[...] + lnfb_ref[...]

    # ---- x[pad_mask, :] = 0.0 ----
    x = x * valid

    # ---- head input projection ----
    h = jnp.dot(x.astype(jnp.bfloat16), win_ref[...],
                preferred_element_type=jnp.float32) + bin_ref[...]   # (B*L, E)

    # ---- conv-ResNet1D blocks: h = h + relu(conv1d_same_k3(h)) ----
    # Halo handling stays in-kernel: sprev/snext are boundary-aware shift
    # matrices (zero across sequence boundaries), applied on the MXU.
    sprev = sprev_ref[...]
    snext = snext_ref[...]
    for nb in range(num_blocks):
        h_prev = jnp.dot(sprev, h, preferred_element_type=jnp.float32)  # h[l-1] or 0
        h_next = jnp.dot(snext, h, preferred_element_type=jnp.float32)  # h[l+1] or 0
        hcat = jnp.concatenate([h_prev, h, h_next], axis=-1)            # (B*L, 3E)
        y = jnp.dot(hcat.astype(jnp.bfloat16), convw_ref[nb],
                    preferred_element_type=jnp.float32) + convb_ref[nb]
        h = h + jnp.maximum(y, 0.0)

    # ---- masked mean pooling over valid positions ----
    h = h * valid
    seq_sum = jnp.dot(pool_ref[...], h, preferred_element_type=jnp.float32)      # (B, E)
    cnt = jnp.dot(pool_ref[...], valid, preferred_element_type=jnp.float32)      # (B, 1)
    pooled = seq_sum * pl.reciprocal(jnp.maximum(cnt, 1.0), approx=True)

    # ---- output projection + StandardScaler.inverse_transform ----
    pred = jnp.dot(pooled, wout_ref[...],
                   preferred_element_type=jnp.float32) + bout_ref[...]            # (B, 1)
    pred_ref[...] = pred
    unsc_ref[...] = pred * scale_ref[...] + mean_ref[...]


def prediction_head(params, x, valid):
    B, L, D = x.shape
    BL = B * L

    # Compile-time constant helper matrices (depend only on static shapes).
    idx = jnp.arange(BL)
    same_seq = (idx[:, None] // L) == (idx[None, :] // L)
    s_prev = (((idx[:, None] - 1) == idx[None, :]) & same_seq).astype(jnp.float32)
    s_next = (((idx[:, None] + 1) == idx[None, :]) & same_seq).astype(jnp.float32)
    pool = ((idx[None, :] // L) == jnp.arange(B)[:, None]).astype(jnp.float32)

    return pl.pallas_call(
        functools.partial(_head_kernel, num_blocks=HEAD_NUM_BLOCKS, eps=LN_EPS),
        out_shape=(jax.ShapeDtypeStruct((B, 1), jnp.float32),
                   jax.ShapeDtypeStruct((B, 1), jnp.float32)),
    )(x.reshape(BL, D), valid.reshape(BL, 1), s_prev, s_next, pool,
      params["lnf_g"], params["lnf_b"],
      params["head_in_w"], params["head_in_b"],
      params["head_conv_w"], params["head_conv_b"],
      params["head_out_w"], params["head_out_b"],
      params["scaler_scale"], params["scaler_mean"])


# ----------------------------------------------------------------------------
# Parameters
# ----------------------------------------------------------------------------

def init_params(key):
    ks = iter(jax.random.split(key, 64))

    def nrm(shape, dtype=jnp.float32, scale=0.02):
        return (scale * jax.random.normal(next(ks), shape, jnp.float32)).astype(dtype)

    D, E = LM_EMBED_DIM, HEAD_EMBED_DIM
    params = {}

    emb = nrm((VOCAB, D))
    params["embed"] = emb.at[PAD_IDX].set(0.0)     # nn.Embedding(padding_idx) row = 0

    layers = []
    for _ in range(LM_NUM_LAYERS):
        layers.append(dict(
            ln1_g=jnp.ones((1, D), jnp.float32), ln1_b=jnp.zeros((1, D), jnp.float32),
            # fused [Wq | Wk | Wv] along the output dim (bf16 for the MXU)
            wqkv=nrm((D, 3 * D), jnp.bfloat16), bqkv=jnp.zeros((1, 3 * D), jnp.float32),
            wo=nrm((D, D), jnp.bfloat16), bo=jnp.zeros((1, D), jnp.float32),
            ln2_g=jnp.ones((1, D), jnp.float32), ln2_b=jnp.zeros((1, D), jnp.float32),
            w1=nrm((D, 4 * D), jnp.bfloat16), b1=jnp.zeros((1, 4 * D), jnp.float32),
            w2=nrm((4 * D, D), jnp.bfloat16), b2=jnp.zeros((1, D), jnp.float32),
        ))
    params["layers"] = layers
    params["lnf_g"] = jnp.ones((1, D), jnp.float32)
    params["lnf_b"] = jnp.zeros((1, D), jnp.float32)

    # prediction head
    params["head_in_w"] = nrm((D, E), jnp.bfloat16)
    params["head_in_b"] = jnp.zeros((1, E), jnp.float32)
    # conv weights stacked per block as (3*E_in, E_out):
    #   rows [k*E:(k+1)*E] correspond to kernel tap k (0 -> x[l-1], 1 -> x[l], 2 -> x[l+1])
    # TODO(synk): a real PyTorch Conv1d checkpoint is (C_out, C_in, K); transpose at load.
    params["head_conv_w"] = nrm((HEAD_NUM_BLOCKS, 3 * E, E), jnp.bfloat16)
    params["head_conv_b"] = jnp.zeros((HEAD_NUM_BLOCKS, 1, E), jnp.float32)
    params["head_out_w"] = nrm((E, 1))
    params["head_out_b"] = jnp.zeros((1, 1), jnp.float32)

    # StandardScaler statistics (fit offline in the original pipeline)
    params["scaler_mean"] = jnp.full((1, 1), 1.25, jnp.float32)
    params["scaler_scale"] = jnp.full((1, 1), 2.5, jnp.float32)
    return params


# ----------------------------------------------------------------------------
# Forward pass
# ----------------------------------------------------------------------------

def forward(params, tokens):
    B, L = tokens.shape
    H = LM_NUM_HEADS

    pad_mask = (tokens == PAD_IDX)
    valid = (~pad_mask).astype(jnp.float32)                       # (B, L)

    # ---- language model: x = self.lm(tokens)['representation'] ----
    x = jnp.take(params["embed"], tokens, axis=0)                 # (B, L, D) gather glue
    key_bias = (pad_mask.astype(jnp.float32) * -1e9).reshape(B, 1, L)
    for p in params["layers"]:
        x = transformer_block(p, x, key_bias, num_heads=H)        # one fused kernel / layer

    # ---- final LN, pad zeroing, pred head, inverse scaler (one fused kernel) ----
    pred, preds_unscaled = prediction_head(params, x, valid)
    return pred, preds_unscaled


# ----------------------------------------------------------------------------
# Main
# ----------------------------------------------------------------------------
if __name__ == "__main__":
    key = jax.random.PRNGKey(0)
    pkey, tkey = jax.random.split(key)
    params = init_params(pkey)

    B, L = 2, 8
    tokens = jax.random.randint(tkey, (B, L), 1, VOCAB, dtype=jnp.int32)
    tokens = tokens.at[0, -3:].set(PAD_IDX)              # some padding at sequence ends
    tokens = tokens.at[1, -1:].set(PAD_IDX)

    pred, preds_unscaled = jax.jit(forward)(params, tokens)
    jax.block_until_ready((pred, preds_unscaled))
    print("KERNEL_OK")
</pallas_src>

<mosaic_0001>
module attributes {stable_mosaic.version = 11 : i64} {
  func.func @_transformer_block_kernel(%arg0: i32, %arg1: memref<1x8x32xf32, #tpu.memory_space<vmem>>, %arg2: memref<1x1x8xf32, #tpu.memory_space<vmem>>, %arg3: memref<1x32xf32, #tpu.memory_space<vmem>>, %arg4: memref<1x32xf32, #tpu.memory_space<vmem>>, %arg5: memref<32x96xbf16, #tpu.memory_space<vmem>>, %arg6: memref<1x96xf32, #tpu.memory_space<vmem>>, %arg7: memref<32x32xbf16, #tpu.memory_space<vmem>>, %arg8: memref<1x32xf32, #tpu.memory_space<vmem>>, %arg9: memref<1x32xf32, #tpu.memory_space<vmem>>, %arg10: memref<1x32xf32, #tpu.memory_space<vmem>>, %arg11: memref<32x128xbf16, #tpu.memory_space<vmem>>, %arg12: memref<1x128xf32, #tpu.memory_space<vmem>>, %arg13: memref<128x32xbf16, #tpu.memory_space<vmem>>, %arg14: memref<1x32xf32, #tpu.memory_space<vmem>>, %arg15: memref<1x8x32xf32, #tpu.memory_space<vmem>>) attributes {dimension_semantics = [#tpu.dimension_semantics<parallel>], iteration_bounds = array<i64: 2>, scalar_prefetch = 0 : i64, scratch_operands = 0 : i64, tpu.core_type = #tpu.core_type<tc>, window_params = [{transform_indices = @transform_0, window_bounds = array<i64: 1, 8, 32>}, {transform_indices = @transform_1, window_bounds = array<i64: 1, 1, 8>}, {pipeline_mode = #tpu.pipeline_mode<synchronous>, transform_indices = @transform_2, window_bounds = array<i64: 1, 32>}, {pipeline_mode = #tpu.pipeline_mode<synchronous>, transform_indices = @transform_3, window_bounds = array<i64: 1, 32>}, {pipeline_mode = #tpu.pipeline_mode<synchronous>, transform_indices = @transform_4, window_bounds = array<i64: 32, 96>}, {pipeline_mode = #tpu.pipeline_mode<synchronous>, transform_indices = @transform_5, window_bounds = array<i64: 1, 96>}, {pipeline_mode = #tpu.pipeline_mode<synchronous>, transform_indices = @transform_6, window_bounds = array<i64: 32, 32>}, {pipeline_mode = #tpu.pipeline_mode<synchronous>, transform_indices = @transform_7, window_bounds = array<i64: 1, 32>}, {pipeline_mode = #tpu.pipeline_mode<synchronous>, transform_indices = @transform_8, window_bounds = array<i64: 1, 32>}, {pipeline_mode = #tpu.pipeline_mode<synchronous>, transform_indices = @transform_9, window_bounds = array<i64: 1, 32>}, {pipeline_mode = #tpu.pipeline_mode<synchronous>, transform_indices = @transform_10, window_bounds = array<i64: 32, 128>}, {pipeline_mode = #tpu.pipeline_mode<synchronous>, transform_indices = @transform_11, window_bounds = array<i64: 1, 128>}, {pipeline_mode = #tpu.pipeline_mode<synchronous>, transform_indices = @transform_12, window_bounds = array<i64: 128, 32>}, {pipeline_mode = #tpu.pipeline_mode<synchronous>, transform_indices = @transform_13, window_bounds = array<i64: 1, 32>}, {transform_indices = @transform_14, window_bounds = array<i64: 1, 8, 32>}]} {
    %c0 = arith.constant 0 : index
    %c0_0 = arith.constant 0 : index
    %c0_1 = arith.constant 0 : index
    %0 = vector.load %arg1[%c0, %c0_0, %c0_1] : memref<1x8x32xf32, #tpu.memory_space<vmem>>, vector<1x8x32xf32>
    %1 = vector.shape_cast %0 : vector<1x8x32xf32> to vector<8x32xf32>
    %c0_2 = arith.constant 0 : index
    %c0_3 = arith.constant 0 : index
    %c0_4 = arith.constant 0 : index
    %2 = vector.load %arg2[%c0_2, %c0_3, %c0_4] : memref<1x1x8xf32, #tpu.memory_space<vmem>>, vector<1x1x8xf32>
    %3 = vector.shape_cast %2 : vector<1x1x8xf32> to vector<1x8xf32>
    %cst = arith.constant dense<0.000000e+00> : vector<8xf32>
    %4 = vector.multi_reduction <add>, %1, %cst [1] : vector<8x32xf32> to vector<8xf32>
    %5 = vector.shape_cast %4 : vector<8xf32> to vector<8x1xf32>
    %cst_5 = arith.constant 3.200000e+01 : f32
    %6 = vector.broadcast %cst_5 : f32 to vector<8x1xf32>
    %7 = arith.divf %5, %6 : vector<8x1xf32>
    %8 = vector.broadcast %7 : vector<8x1xf32> to vector<8x32xf32>
    %9 = arith.subf %1, %8 : vector<8x32xf32>
    %10 = arith.mulf %9, %9 : vector<8x32xf32>
    %cst_6 = arith.constant dense<0.000000e+00> : vector<8xf32>
    %11 = vector.multi_reduction <add>, %10, %cst_6 [1] : vector<8x32xf32> to vector<8xf32>
    %12 = vector.shape_cast %11 : vector<8xf32> to vector<8x1xf32>
    %cst_7 = arith.constant 3.200000e+01 : f32
    %13 = vector.broadcast %cst_7 : f32 to vector<8x1xf32>
    %14 = arith.divf %12, %13 : vector<8x1xf32>
    %15 = vector.broadcast %7 : vector<8x1xf32> to vector<8x32xf32>
    %16 = arith.subf %1, %15 : vector<8x32xf32>
    %cst_8 = arith.constant 9.99999974E-6 : f32
    %17 = vector.broadcast %cst_8 : f32 to vector<8x1xf32>
    %18 = arith.addf %14, %17 : vector<8x1xf32>
    %19 = math.rsqrt %18 : vector<8x1xf32>
    %20 = vector.broadcast %19 : vector<8x1xf32> to vector<8x32xf32>
    %21 = arith.mulf %16, %20 : vector<8x32xf32>
    %c0_9 = arith.constant 0 : index
    %c0_10 = arith.constant 0 : index
    %22 = vector.load %arg3[%c0_9, %c0_10] : memref<1x32xf32, #tpu.memory_space<vmem>>, vector<1x32xf32>
    %23 = vector.broadcast %22 : vector<1x32xf32> to vector<8x32xf32>
    %24 = arith.mulf %21, %23 : vector<8x32xf32>
    %c0_11 = arith.constant 0 : index
    %c0_12 = arith.constant 0 : index
    %25 = vector.load %arg4[%c0_11, %c0_12] : memref<1x32xf32, #tpu.memory_space<vmem>>, vector<1x32xf32>
    %26 = vector.broadcast %25 : vector<1x32xf32> to vector<8x32xf32>
    %27 = arith.addf %24, %26 : vector<8x32xf32>
    %28 = arith.truncf %27 : vector<8x32xf32> to vector<8x32xbf16>
    %c0_13 = arith.constant 0 : index
    %c0_14 = arith.constant 0 : index
    %29 = vector.load %arg5[%c0_13, %c0_14] : memref<32x96xbf16, #tpu.memory_space<vmem>>, vector<32x96xbf16>
    %cst_15 = arith.constant dense<0.000000e+00> : vector<8x96xf32>
    %30 = tpu.matmul %28, %29, %cst_15 {dimension_numbers = #tpu.dot_dimension_numbers<[1], [0], [0], [1], [0, 0, 1, 1], [], []>} : vector<8x32xbf16>, vector<32x96xbf16>, vector<8x96xf32> -> vector<8x96xf32>
    %c0_16 = arith.constant 0 : index
    %c0_17 = arith.constant 0 : index
    %31 = vector.load %arg6[%c0_16, %c0_17] : memref<1x96xf32, #tpu.memory_space<vmem>>, vector<1x96xf32>
    %32 = vector.broadcast %31 : vector<1x96xf32> to vector<8x96xf32>
    %33 = arith.addf %30, %32 : vector<8x96xf32>
    %34 = vector.extract_strided_slice %33 {offsets = [0, 0], sizes = [8, 8], strides = [1, 1]} : vector<8x96xf32> to vector<8x8xf32>
    %35 = vector.extract_strided_slice %33 {offsets = [0, 32], sizes = [8, 8], strides = [1, 1]} : vector<8x96xf32> to vector<8x8xf32>
    %36 = vector.extract_strided_slice %33 {offsets = [0, 64], sizes = [8, 8], strides = [1, 1]} : vector<8x96xf32> to vector<8x8xf32>
    %cst_18 = arith.constant dense<0.000000e+00> : vector<8x8xf32>
    %37 = tpu.matmul %34, %35, %cst_18 {dimension_numbers = #tpu.dot_dimension_numbers<[1], [1], [0], [0], [0, 0, 1, 0], [], []>} : vector<8x8xf32>, vector<8x8xf32>, vector<8x8xf32> -> vector<8x8xf32>
    %cst_19 = arith.constant 0.353553385 : f32
    %38 = vector.broadcast %cst_19 : f32 to vector<8x8xf32>
    %39 = arith.mulf %37, %38 : vector<8x8xf32>
    %40 = vector.broadcast %3 : vector<1x8xf32> to vector<8x8xf32>
    %41 = arith.addf %39, %40 : vector<8x8xf32>
    %cst_20 = arith.constant dense<0xFF800000> : vector<8xf32>
    %42 = vector.multi_reduction <maximumf>, %41, %cst_20 [1] : vector<8x8xf32> to vector<8xf32>
    %43 = vector.shape_cast %42 : vector<8xf32> to vector<8x1xf32>
    %44 = vector.broadcast %43 : vector<8x1xf32> to vector<8x8xf32>
    %45 = arith.subf %41, %44 : vector<8x8xf32>
    %46 = math.exp %45 : vector<8x8xf32>
    %cst_21 = arith.constant dense<0.000000e+00> : vector<8xf32>
    %47 = vector.multi_reduction <add>, %46, %cst_21 [1] : vector<8x8xf32> to vector<8xf32>
    %48 = vector.shape_cast %47 : vector<8xf32> to vector<8x1xf32>
    %49 = tpu.reciprocal %48 {approx = true} : vector<8x1xf32> -> vector<8x1xf32>
    %50 = vector.broadcast %49 : vector<8x1xf32> to vector<8x8xf32>
    %51 = arith.mulf %46, %50 : vector<8x8xf32>
    %cst_22 = arith.constant dense<0.000000e+00> : vector<8x8xf32>
    %52 = tpu.matmul %51, %36, %cst_22 {dimension_numbers = #tpu.dot_dimension_numbers<[1], [0], [0], [1], [0, 0, 1, 1], [], []>} : vector<8x8xf32>, vector<8x8xf32>, vector<8x8xf32> -> vector<8x8xf32>
    %53 = vector.extract_strided_slice %33 {offsets = [0, 8], sizes = [8, 8], strides = [1, 1]} : vector<8x96xf32> to vector<8x8xf32>
    %54 = vector.extract_strided_slice %33 {offsets = [0, 40], sizes = [8, 8], strides = [1, 1]} : vector<8x96xf32> to vector<8x8xf32>
    %55 = vector.extract_strided_slice %33 {offsets = [0, 72], sizes = [8, 8], strides = [1, 1]} : vector<8x96xf32> to vector<8x8xf32>
    %cst_23 = arith.constant dense<0.000000e+00> : vector<8x8xf32>
    %56 = tpu.matmul %53, %54, %cst_23 {dimension_numbers = #tpu.dot_dimension_numbers<[1], [1], [0], [0], [0, 0, 1, 0], [], []>} : vector<8x8xf32>, vector<8x8xf32>, vector<8x8xf32> -> vector<8x8xf32>
    %cst_24 = arith.constant 0.353553385 : f32
    %57 = vector.broadcast %cst_24 : f32 to vector<8x8xf32>
    %58 = arith.mulf %56, %57 : vector<8x8xf32>
    %59 = vector.broadcast %3 : vector<1x8xf32> to vector<8x8xf32>
    %60 = arith.addf %58, %59 : vector<8x8xf32>
    %cst_25 = arith.constant dense<0xFF800000> : vector<8xf32>
    %61 = vector.multi_reduction <maximumf>, %60, %cst_25 [1] : vector<8x8xf32> to vector<8xf32>
    %62 = vector.shape_cast %61 : vector<8xf32> to vector<8x1xf32>
    %63 = vector.broadcast %62 : vector<8x1xf32> to vector<8x8xf32>
    %64 = arith.subf %60, %63 : vector<8x8xf32>
    %65 = math.exp %64 : vector<8x8xf32>
    %cst_26 = arith.constant dense<0.000000e+00> : vector<8xf32>
    %66 = vector.multi_reduction <add>, %65, %cst_26 [1] : vector<8x8xf32> to vector<8xf32>
    %67 = vector.shape_cast %66 : vector<8xf32> to vector<8x1xf32>
    %68 = tpu.reciprocal %67 {approx = true} : vector<8x1xf32> -> vector<8x1xf32>
    %69 = vector.broadcast %68 : vector<8x1xf32> to vector<8x8xf32>
    %70 = arith.mulf %65, %69 : vector<8x8xf32>
    %cst_27 = arith.constant dense<0.000000e+00> : vector<8x8xf32>
    %71 = tpu.matmul %70, %55, %cst_27 {dimension_numbers = #tpu.dot_dimension_numbers<[1], [0], [0], [1], [0, 0, 1, 1], [], []>} : vector<8x8xf32>, vector<8x8xf32>, vector<8x8xf32> -> vector<8x8xf32>
    %72 = vector.extract_strided_slice %33 {offsets = [0, 16], sizes = [8, 8], strides = [1, 1]} : vector<8x96xf32> to vector<8x8xf32>
    %73 = vector.extract_strided_slice %33 {offsets = [0, 48], sizes = [8, 8], strides = [1, 1]} : vector<8x96xf32> to vector<8x8xf32>
    %74 = vector.extract_strided_slice %33 {offsets = [0, 80], sizes = [8, 8], strides = [1, 1]} : vector<8x96xf32> to vector<8x8xf32>
    %cst_28 = arith.constant dense<0.000000e+00> : vector<8x8xf32>
    %75 = tpu.matmul %72, %73, %cst_28 {dimension_numbers = #tpu.dot_dimension_numbers<[1], [1], [0], [0], [0, 0, 1, 0], [], []>} : vector<8x8xf32>, vector<8x8xf32>, vector<8x8xf32> -> vector<8x8xf32>
    %cst_29 = arith.constant 0.353553385 : f32
    %76 = vector.broadcast %cst_29 : f32 to vector<8x8xf32>
    %77 = arith.mulf %75, %76 : vector<8x8xf32>
    %78 = vector.broadcast %3 : vector<1x8xf32> to vector<8x8xf32>
    %79 = arith.addf %77, %78 : vector<8x8xf32>
    %cst_30 = arith.constant dense<0xFF800000> : vector<8xf32>
    %80 = vector.multi_reduction <maximumf>, %79, %cst_30 [1] : vector<8x8xf32> to vector<8xf32>
    %81 = vector.shape_cast %80 : vector<8xf32> to vector<8x1xf32>
    %82 = vector.broadcast %81 : vector<8x1xf32> to vector<8x8xf32>
    %83 = arith.subf %79, %82 : vector<8x8xf32>
    %84 = math.exp %83 : vector<8x8xf32>
    %cst_31 = arith.constant dense<0.000000e+00> : vector<8xf32>
    %85 = vector.multi_reduction <add>, %84, %cst_31 [1] : vector<8x8xf32> to vector<8xf32>
    %86 = vector.shape_cast %85 : vector<8xf32> to vector<8x1xf32>
    %87 = tpu.reciprocal %86 {approx = true} : vector<8x1xf32> -> vector<8x1xf32>
    %88 = vector.broadcast %87 : vector<8x1xf32> to vector<8x8xf32>
    %89 = arith.mulf %84, %88 : vector<8x8xf32>
    %cst_32 = arith.constant dense<0.000000e+00> : vector<8x8xf32>
    %90 = tpu.matmul %89, %74, %cst_32 {dimension_numbers = #tpu.dot_dimension_numbers<[1], [0], [0], [1], [0, 0, 1, 1], [], []>} : vector<8x8xf32>, vector<8x8xf32>, vector<8x8xf32> -> vector<8x8xf32>
    %91 = vector.extract_strided_slice %33 {offsets = [0, 24], sizes = [8, 8], strides = [1, 1]} : vector<8x96xf32> to vector<8x8xf32>
    %92 = vector.extract_strided_slice %33 {offsets = [0, 56], sizes = [8, 8], strides = [1, 1]} : vector<8x96xf32> to vector<8x8xf32>
    %93 = vector.extract_strided_slice %33 {offsets = [0, 88], sizes = [8, 8], strides = [1, 1]} : vector<8x96xf32> to vector<8x8xf32>
    %cst_33 = arith.constant dense<0.000000e+00> : vector<8x8xf32>
    %94 = tpu.matmul %91, %92, %cst_33 {dimension_numbers = #tpu.dot_dimension_numbers<[1], [1], [0], [0], [0, 0, 1, 0], [], []>} : vector<8x8xf32>, vector<8x8xf32>, vector<8x8xf32> -> vector<8x8xf32>
    %cst_34 = arith.constant 0.353553385 : f32
    %95 = vector.broadcast %cst_34 : f32 to vector<8x8xf32>
    %96 = arith.mulf %94, %95 : vector<8x8xf32>
    %97 = vector.broadcast %3 : vector<1x8xf32> to vector<8x8xf32>
    %98 = arith.addf %96, %97 : vector<8x8xf32>
    %cst_35 = arith.constant dense<0xFF800000> : vector<8xf32>
    %99 = vector.multi_reduction <maximumf>, %98, %cst_35 [1] : vector<8x8xf32> to vector<8xf32>
    %100 = vector.shape_cast %99 : vector<8xf32> to vector<8x1xf32>
    %101 = vector.broadcast %100 : vector<8x1xf32> to vector<8x8xf32>
    %102 = arith.subf %98, %101 : vector<8x8xf32>
    %103 = math.exp %102 : vector<8x8xf32>
    %cst_36 = arith.constant dense<0.000000e+00> : vector<8xf32>
    %104 = vector.multi_reduction <add>, %103, %cst_36 [1] : vector<8x8xf32> to vector<8xf32>
    %105 = vector.shape_cast %104 : vector<8xf32> to vector<8x1xf32>
    %106 = tpu.reciprocal %105 {approx = true} : vector<8x1xf32> -> vector<8x1xf32>
    %107 = vector.broadcast %106 : vector<8x1xf32> to vector<8x8xf32>
    %108 = arith.mulf %103, %107 : vector<8x8xf32>
    %cst_37 = arith.constant dense<0.000000e+00> : vector<8x8xf32>
    %109 = tpu.matmul %108, %93, %cst_37 {dimension_numbers = #tpu.dot_dimension_numbers<[1], [0], [0], [1], [0, 0, 1, 1], [], []>} : vector<8x8xf32>, vector<8x8xf32>, vector<8x8xf32> -> vector<8x8xf32>
    %110 = tpu.concatenate %52, %71, %90, %109 in 1 : vector<8x8xf32>, vector<8x8xf32>, vector<8x8xf32>, vector<8x8xf32> -> vector<8x32xf32>
    %111 = arith.truncf %110 : vector<8x32xf32> to vector<8x32xbf16>
    %c0_38 = arith.constant 0 : index
    %c0_39 = arith.constant 0 : index
    %112 = vector.load %arg7[%c0_38, %c0_39] : memref<32x32xbf16, #tpu.memory_space<vmem>>, vector<32x32xbf16>
    %cst_40 = arith.constant dense<0.000000e+00> : vector<8x32xf32>
    %113 = tpu.matmul %111, %112, %cst_40 {dimension_numbers = #tpu.dot_dimension_numbers<[1], [0], [0], [1], [0, 0, 1, 1], [], []>} : vector<8x32xbf16>, vector<32x32xbf16>, vector<8x32xf32> -> vector<8x32xf32>
    %114 = arith.addf %1, %113 : vector<8x32xf32>
    %c0_41 = arith.constant 0 : index
    %c0_42 = arith.constant 0 : index
    %115 = vector.load %arg8[%c0_41, %c0_42] : memref<1x32xf32, #tpu.memory_space<vmem>>, vector<1x32xf32>
    %116 = vector.broadcast %115 : vector<1x32xf32> to vector<8x32xf32>
    %117 = arith.addf %114, %116 : vector<8x32xf32>
    %cst_43 = arith.constant dense<0.000000e+00> : vector<8xf32>
    %118 = vector.multi_reduction <add>, %117, %cst_43 [1] : vector<8x32xf32> to vector<8xf32>
    %119 = vector.shape_cast %118 : vector<8xf32> to vector<8x1xf32>
    %cst_44 = arith.constant 3.200000e+01 : f32
    %120 = vector.broadcast %cst_44 : f32 to vector<8x1xf32>
    %121 = arith.divf %119, %120 : vector<8x1xf32>
    %122 = vector.broadcast %121 : vector<8x1xf32> to vector<8x32xf32>
    %123 = arith.subf %117, %122 : vector<8x32xf32>
    %124 = arith.mulf %123, %123 : vector<8x32xf32>
    %cst_45 = arith.constant dense<0.000000e+00> : vector<8xf32>
    %125 = vector.multi_reduction <add>, %124, %cst_45 [1] : vector<8x32xf32> to vector<8xf32>
    %126 = vector.shape_cast %125 : vector<8xf32> to vector<8x1xf32>
    %cst_46 = arith.constant 3.200000e+01 : f32
    %127 = vector.broadcast %cst_46 : f32 to vector<8x1xf32>
    %128 = arith.divf %126, %127 : vector<8x1xf32>
    %129 = vector.broadcast %121 : vector<8x1xf32> to vector<8x32xf32>
    %130 = arith.subf %117, %129 : vector<8x32xf32>
    %cst_47 = arith.constant 9.99999974E-6 : f32
    %131 = vector.broadcast %cst_47 : f32 to vector<8x1xf32>
    %132 = arith.addf %128, %131 : vector<8x1xf32>
    %133 = math.rsqrt %132 : vector<8x1xf32>
    %134 = vector.broadcast %133 : vector<8x1xf32> to vector<8x32xf32>
    %135 = arith.mulf %130, %134 : vector<8x32xf32>
    %c0_48 = arith.constant 0 : index
    %c0_49 = arith.constant 0 : index
    %136 = vector.load %arg9[%c0_48, %c0_49] : memref<1x32xf32, #tpu.memory_space<vmem>>, vector<1x32xf32>
    %137 = vector.broadcast %136 : vector<1x32xf32> to vector<8x32xf32>
    %138 = arith.mulf %135, %137 : vector<8x32xf32>
    %c0_50 = arith.constant 0 : index
    %c0_51 = arith.constant 0 : index
    %139 = vector.load %arg10[%c0_50, %c0_51] : memref<1x32xf32, #tpu.memory_space<vmem>>, vector<1x32xf32>
    %140 = vector.broadcast %139 : vector<1x32xf32> to vector<8x32xf32>
    %141 = arith.addf %138, %140 : vector<8x32xf32>
    %142 = arith.truncf %141 : vector<8x32xf32> to vector<8x32xbf16>
    %c0_52 = arith.constant 0 : index
    %c0_53 = arith.constant 0 : index
    %143 = vector.load %arg11[%c0_52, %c0_53] : memref<32x128xbf16, #tpu.memory_space<vmem>>, vector<32x128xbf16>
    %cst_54 = arith.constant dense<0.000000e+00> : vector<8x128xf32>
    %144 = tpu.matmul %142, %143, %cst_54 {dimension_numbers = #tpu.dot_dimension_numbers<[1], [0], [0], [1], [0, 0, 1, 1], [], []>} : vector<8x32xbf16>, vector<32x128xbf16>, vector<8x128xf32> -> vector<8x128xf32>
    %c0_55 = arith.constant 0 : index
    %c0_56 = arith.constant 0 : index
    %145 = vector.load %arg12[%c0_55, %c0_56] : memref<1x128xf32, #tpu.memory_space<vmem>>, vector<1x128xf32>
    %146 = vector.broadcast %145 : vector<1x128xf32> to vector<8x128xf32>
    %147 = arith.addf %144, %146 : vector<8x128xf32>
    %148 = arith.mulf %147, %147 : vector<8x128xf32>
    %149 = arith.mulf %147, %148 : vector<8x128xf32>
    %cst_57 = arith.constant 4.471500e-02 : f32
    %150 = vector.broadcast %cst_57 : f32 to vector<8x128xf32>
    %151 = arith.mulf %150, %149 : vector<8x128xf32>
    %152 = arith.addf %147, %151 : vector<8x128xf32>
    %cst_58 = arith.constant 0.797884583 : f32
    %153 = vector.broadcast %cst_58 : f32 to vector<8x128xf32>
    %154 = arith.mulf %153, %152 : vector<8x128xf32>
    %155 = math.tanh %154 : vector<8x128xf32>
    %cst_59 = arith.constant 1.000000e+00 : f32
    %156 = vector.broadcast %cst_59 : f32 to vector<8x128xf32>
    %157 = arith.addf %156, %155 : vector<8x128xf32>
    %cst_60 = arith.constant 5.000000e-01 : f32
    %158 = vector.broadcast %cst_60 : f32 to vector<8x128xf32>
    %159 = arith.mulf %158, %157 : vector<8x128xf32>
    %160 = arith.mulf %147, %159 : vector<8x128xf32>
    %161 = arith.truncf %160 : vector<8x128xf32> to vector<8x128xbf16>
    %c0_61 = arith.constant 0 : index
    %c0_62 = arith.constant 0 : index
    %162 = vector.load %arg13[%c0_61, %c0_62] : memref<128x32xbf16, #tpu.memory_space<vmem>>, vector<128x32xbf16>
    %cst_63 = arith.constant dense<0.000000e+00> : vector<8x32xf32>
    %163 = tpu.matmul %161, %162, %cst_63 {dimension_numbers = #tpu.dot_dimension_numbers<[1], [0], [0], [1], [0, 0, 1, 1], [], []>} : vector<8x128xbf16>, vector<128x32xbf16>, vector<8x32xf32> -> vector<8x32xf32>
    %164 = arith.addf %117, %163 : vector<8x32xf32>
    %c0_64 = arith.constant 0 : index
    %c0_65 = arith.constant 0 : index
    %165 = vector.load %arg14[%c0_64, %c0_65] : memref<1x32xf32, #tpu.memory_space<vmem>>, vector<1x32xf32>
    %166 = vector.broadcast %165 : vector<1x32xf32> to vector<8x32xf32>
    %167 = arith.addf %164, %166 : vector<8x32xf32>
    %c0_66 = arith.constant 0 : index
    %c0_67 = arith.constant 0 : index
    %c0_68 = arith.constant 0 : index
    %168 = vector.load %arg15[%c0_66, %c0_67, %c0_68] : memref<1x8x32xf32, #tpu.memory_space<vmem>>, vector<1x8x32xf32>
    %169 = vector.shape_cast %168 : vector<1x8x32xf32> to vector<8x32xf32>
    %170 = vector.shape_cast %167 : vector<8x32xf32> to vector<1x8x32xf32>
    tpu.vector_store %arg15[%c0_66, %c0_67, %c0_68], %170 {strides = array<i32>} : memref<1x8x32xf32, #tpu.memory_space<vmem>>, vector<1x8x32xf32>,
    return
  }
  func.func @transform_0(%arg0: i32) -> (i32, i32, i32) {
    %c0_i32 = arith.constant 0 : i32
    %c0_i32_0 = arith.constant 0 : i32
    %c0_i32_1 = arith.constant 0 : i32
    return %arg0, %c0_i32, %c0_i32_0 : i32, i32, i32
  }
  func.func @transform_1(%arg0: i32) -> (i32, i32, i32) {
    %c0_i32 = arith.constant 0 : i32
    %c0_i32_0 = arith.constant 0 : i32
    %c0_i32_1 = arith.constant 0 : i32
    return %arg0, %c0_i32, %c0_i32_0 : i32, i32, i32
  }
  func.func @transform_2(%arg0: i32) -> (i32, i32) {
    %c0_i32 = arith.constant 0 : i32
    %c0_i32_0 = arith.constant 0 : i32
    %c0_i32_1 = arith.constant 0 : i32
    return %c0_i32, %c0_i32_0 : i32, i32
  }
  func.func @transform_3(%arg0: i32) -> (i32, i32) {
    %c0_i32 = arith.constant 0 : i32
    %c0_i32_0 = arith.constant 0 : i32
    %c0_i32_1 = arith.constant 0 : i32
    return %c0_i32, %c0_i32_0 : i32, i32
  }
  func.func @transform_4(%arg0: i32) -> (i32, i32) {
    %c0_i32 = arith.constant 0 : i32
    %c0_i32_0 = arith.constant 0 : i32
    %c0_i32_1 = arith.constant 0 : i32
    return %c0_i32, %c0_i32_0 : i32, i32
  }
  func.func @transform_5(%arg0: i32) -> (i32, i32) {
    %c0_i32 = arith.constant 0 : i32
    %c0_i32_0 = arith.constant 0 : i32
    %c0_i32_1 = arith.constant 0 : i32
    return %c0_i32, %c0_i32_0 : i32, i32
  }
  func.func @transform_6(%arg0: i32) -> (i32, i32) {
    %c0_i32 = arith.constant 0 : i32
    %c0_i32_0 = arith.constant 0 : i32
    %c0_i32_1 = arith.constant 0 : i32
    return %c0_i32, %c0_i32_0 : i32, i32
  }
  func.func @transform_7(%arg0: i32) -> (i32, i32) {
    %c0_i32 = arith.constant 0 : i32
    %c0_i32_0 = arith.constant 0 : i32
    %c0_i32_1 = arith.constant 0 : i32
    return %c0_i32, %c0_i32_0 : i32, i32
  }
  func.func @transform_8(%arg0: i32) -> (i32, i32) {
    %c0_i32 = arith.constant 0 : i32
    %c0_i32_0 = arith.constant 0 : i32
    %c0_i32_1 = arith.constant 0 : i32
    return %c0_i32, %c0_i32_0 : i32, i32
  }
  func.func @transform_9(%arg0: i32) -> (i32, i32) {
    %c0_i32 = arith.constant 0 : i32
    %c0_i32_0 = arith.constant 0 : i32
    %c0_i32_1 = arith.constant 0 : i32
    return %c0_i32, %c0_i32_0 : i32, i32
  }
  func.func @transform_10(%arg0: i32) -> (i32, i32) {
    %c0_i32 = arith.constant 0 : i32
    %c0_i32_0 = arith.constant 0 : i32
    %c0_i32_1 = arith.constant 0 : i32
    return %c0_i32, %c0_i32_0 : i32, i32
  }
  func.func @transform_11(%arg0: i32) -> (i32, i32) {
    %c0_i32 = arith.constant 0 : i32
    %c0_i32_0 = arith.constant 0 : i32
    %c0_i32_1 = arith.constant 0 : i32
    return %c0_i32, %c0_i32_0 : i32, i32
  }
  func.func @transform_12(%arg0: i32) -> (i32, i32) {
    %c0_i32 = arith.constant 0 : i32
    %c0_i32_0 = arith.constant 0 : i32
    %c0_i32_1 = arith.constant 0 : i32
    return %c0_i32, %c0_i32_0 : i32, i32
  }
  func.func @transform_13(%arg0: i32) -> (i32, i32) {
    %c0_i32 = arith.constant 0 : i32
    %c0_i32_0 = arith.constant 0 : i32
    %c0_i32_1 = arith.constant 0 : i32
    return %c0_i32, %c0_i32_0 : i32, i32
  }
  func.func @transform_14(%arg0: i32) -> (i32, i32, i32) {
    %c0_i32 = arith.constant 0 : i32
    %c0_i32_0 = arith.constant 0 : i32
    %c0_i32_1 = arith.constant 0 : i32
    return %arg0, %c0_i32, %c0_i32_0 : i32, i32, i32
  }
}

module attributes {stable_mosaic.version = 11 : i64} {
  func.func @_head_kernel(%arg0: memref<16x32xf32, #tpu.memory_space<vmem>>, %arg1: memref<16x1xf32, #tpu.memory_space<vmem>>, %arg2: memref<16x16xf32, #tpu.memory_space<vmem>>, %arg3: memref<16x16xf32, #tpu.memory_space<vmem>>, %arg4: memref<2x16xf32, #tpu.memory_space<vmem>>, %arg5: memref<1x32xf32, #tpu.memory_space<vmem>>, %arg6: memref<1x32xf32, #tpu.memory_space<vmem>>, %arg7: memref<32x32xbf16, #tpu.memory_space<vmem>>, %arg8: memref<1x32xf32, #tpu.memory_space<vmem>>, %arg9: memref<6x96x32xbf16, #tpu.memory_space<vmem>>, %arg10: memref<6x1x32xf32, #tpu.memory_space<vmem>>, %arg11: memref<32x1xf32, #tpu.memory_space<vmem>>, %arg12: memref<1x1xf32, #tpu.memory_space<vmem>>, %arg13: memref<1x1xf32, #tpu.memory_space<vmem>>, %arg14: memref<1x1xf32, #tpu.memory_space<vmem>>, %arg15: memref<2x1xf32, #tpu.memory_space<vmem>>, %arg16: memref<2x1xf32, #tpu.memory_space<vmem>>) attributes {dimension_semantics = [], scalar_prefetch = 0 : i64, scratch_operands = 0 : i64, tpu.core_type = #tpu.core_type<tc>} {
    %c0 = arith.constant 0 : index
    %c0_0 = arith.constant 0 : index
    %0 = vector.load %arg0[%c0, %c0_0] : memref<16x32xf32, #tpu.memory_space<vmem>>, vector<16x32xf32>
    %c0_1 = arith.constant 0 : index
    %c0_2 = arith.constant 0 : index
    %1 = vector.load %arg1[%c0_1, %c0_2] : memref<16x1xf32, #tpu.memory_space<vmem>>, vector<16x1xf32>
    %cst = arith.constant dense<0.000000e+00> : vector<16xf32>
    %2 = vector.multi_reduction <add>, %0, %cst [1] : vector<16x32xf32> to vector<16xf32>
    %3 = vector.shape_cast %2 : vector<16xf32> to vector<16x1xf32>
    %cst_3 = arith.constant 3.200000e+01 : f32
    %4 = vector.broadcast %cst_3 : f32 to vector<16x1xf32>
    %5 = arith.divf %3, %4 : vector<16x1xf32>
    %6 = vector.broadcast %5 : vector<16x1xf32> to vector<16x32xf32>
    %7 = arith.subf %0, %6 : vector<16x32xf32>
    %8 = arith.mulf %7, %7 : vector<16x32xf32>
    %cst_4 = arith.constant dense<0.000000e+00> : vector<16xf32>
    %9 = vector.multi_reduction <add>, %8, %cst_4 [1] : vector<16x32xf32> to vector<16xf32>
    %10 = vector.shape_cast %9 : vector<16xf32> to vector<16x1xf32>
    %cst_5 = arith.constant 3.200000e+01 : f32
    %11 = vector.broadcast %cst_5 : f32 to vector<16x1xf32>
    %12 = arith.divf %10, %11 : vector<16x1xf32>
    %13 = vector.broadcast %5 : vector<16x1xf32> to vector<16x32xf32>
    %14 = arith.subf %0, %13 : vector<16x32xf32>
    %cst_6 = arith.constant 9.99999974E-6 : f32
    %15 = vector.broadcast %cst_6 : f32 to vector<16x1xf32>
    %16 = arith.addf %12, %15 : vector<16x1xf32>
    %17 = math.rsqrt %16 : vector<16x1xf32>
    %18 = vector.broadcast %17 : vector<16x1xf32> to vector<16x32xf32>
    %19 = arith.mulf %14, %18 : vector<16x32xf32>
    %c0_7 = arith.constant 0 : index
    %c0_8 = arith.constant 0 : index
    %20 = vector.load %arg5[%c0_7, %c0_8] : memref<1x32xf32, #tpu.memory_space<vmem>>, vector<1x32xf32>
    %21 = vector.broadcast %20 : vector<1x32xf32> to vector<16x32xf32>
    %22 = arith.mulf %19, %21 : vector<16x32xf32>
    %c0_9 = arith.constant 0 : index
    %c0_10 = arith.constant 0 : index
    %23 = vector.load %arg6[%c0_9, %c0_10] : memref<1x32xf32, #tpu.memory_space<vmem>>, vector<1x32xf32>
    %24 = vector.broadcast %23 : vector<1x32xf32> to vector<16x32xf32>
    %25 = arith.addf %22, %24 : vector<16x32xf32>
    %26 = vector.broadcast %1 : vector<16x1xf32> to vector<16x32xf32>
    %27 = arith.mulf %25, %26 : vector<16x32xf32>
    %28 = arith.truncf %27 : vector<16x32xf32> to vector<16x32xbf16>
    %c0_11 = arith.constant 0 : index
    %c0_12 = arith.constant 0 : index
    %29 = vector.load %arg7[%c0_11, %c0_12] : memref<32x32xbf16, #tpu.memory_space<vmem>>, vector<32x32xbf16>
    %cst_13 = arith.constant dense<0.000000e+00> : vector<16x32xf32>
    %30 = tpu.matmul %28, %29, %cst_13 {dimension_numbers = #tpu.dot_dimension_numbers<[1], [0], [0], [1], [0, 0, 1, 1], [], []>} : vector<16x32xbf16>, vector<32x32xbf16>, vector<16x32xf32> -> vector<16x32xf32>
    %c0_14 = arith.constant 0 : index
    %c0_15 = arith.constant 0 : index
    %31 = vector.load %arg8[%c0_14, %c0_15] : memref<1x32xf32, #tpu.memory_space<vmem>>, vector<1x32xf32>
    %32 = vector.broadcast %31 : vector<1x32xf32> to vector<16x32xf32>
    %33 = arith.addf %30, %32 : vector<16x32xf32>
    %c0_16 = arith.constant 0 : index
    %c0_17 = arith.constant 0 : index
    %34 = vector.load %arg2[%c0_16, %c0_17] : memref<16x16xf32, #tpu.memory_space<vmem>>, vector<16x16xf32>
    %c0_18 = arith.constant 0 : index
    %c0_19 = arith.constant 0 : index
    %35 = vector.load %arg3[%c0_18, %c0_19] : memref<16x16xf32, #tpu.memory_space<vmem>>, vector<16x16xf32>
    %cst_20 = arith.constant dense<0.000000e+00> : vector<16x32xf32>
    %36 = tpu.matmul %34, %33, %cst_20 {dimension_numbers = #tpu.dot_dimension_numbers<[1], [0], [0], [1], [0, 0, 1, 1], [], []>} : vector<16x16xf32>, vector<16x32xf32>, vector<16x32xf32> -> vector<16x32xf32>
    %cst_21 = arith.constant dense<0.000000e+00> : vector<16x32xf32>
    %37 = tpu.matmul %35, %33, %cst_21 {dimension_numbers = #tpu.dot_dimension_numbers<[1], [0], [0], [1], [0, 0, 1, 1], [], []>} : vector<16x16xf32>, vector<16x32xf32>, vector<16x32xf32> -> vector<16x32xf32>
    %38 = tpu.concatenate %36, %33, %37 in 1 : vector<16x32xf32>, vector<16x32xf32>, vector<16x32xf32> -> vector<16x96xf32>
    %39 = arith.truncf %38 : vector<16x96xf32> to vector<16x96xbf16>
    %c0_22 = arith.constant 0 : index
    %c0_23 = arith.constant 0 : index
    %c0_24 = arith.constant 0 : index
    %40 = vector.load %arg9[%c0_22, %c0_23, %c0_24] : memref<6x96x32xbf16, #tpu.memory_space<vmem>>, vector<1x96x32xbf16>
    %41 = vector.shape_cast %40 : vector<1x96x32xbf16> to vector<96x32xbf16>
    %cst_25 = arith.constant dense<0.000000e+00> : vector<16x32xf32>
    %42 = tpu.matmul %39, %41, %cst_25 {dimension_numbers = #tpu.dot_dimension_numbers<[1], [0], [0], [1], [0, 0, 1, 1], [], []>} : vector<16x96xbf16>, vector<96x32xbf16>, vector<16x32xf32> -> vector<16x32xf32>
    %c0_26 = arith.constant 0 : index
    %c0_27 = arith.constant 0 : index
    %c0_28 = arith.constant 0 : index
    %43 = vector.load %arg10[%c0_26, %c0_27, %c0_28] : memref<6x1x32xf32, #tpu.memory_space<vmem>>, vector<1x1x32xf32>
    %44 = vector.shape_cast %43 : vector<1x1x32xf32> to vector<1x32xf32>
    %45 = vector.broadcast %44 : vector<1x32xf32> to vector<16x32xf32>
    %46 = arith.addf %42, %45 : vector<16x32xf32>
    %cst_29 = arith.constant 0.000000e+00 : f32
    %47 = vector.broadcast %cst_29 : f32 to vector<16x32xf32>
    %48 = arith.maximumf %46, %47 : vector<16x32xf32>
    %49 = arith.addf %33, %48 : vector<16x32xf32>
    %cst_30 = arith.constant dense<0.000000e+00> : vector<16x32xf32>
    %50 = tpu.matmul %34, %49, %cst_30 {dimension_numbers = #tpu.dot_dimension_numbers<[1], [0], [0], [1], [0, 0, 1, 1], [], []>} : vector<16x16xf32>, vector<16x32xf32>, vector<16x32xf32> -> vector<16x32xf32>
    %cst_31 = arith.constant dense<0.000000e+00> : vector<16x32xf32>
    %51 = tpu.matmul %35, %49, %cst_31 {dimension_numbers = #tpu.dot_dimension_numbers<[1], [0], [0], [1], [0, 0, 1, 1], [], []>} : vector<16x16xf32>, vector<16x32xf32>, vector<16x32xf32> -> vector<16x32xf32>
    %52 = tpu.concatenate %50, %49, %51 in 1 : vector<16x32xf32>, vector<16x32xf32>, vector<16x32xf32> -> vector<16x96xf32>
    %53 = arith.truncf %52 : vector<16x96xf32> to vector<16x96xbf16>
    %c1 = arith.constant 1 : index
    %c0_32 = arith.constant 0 : index
    %c0_33 = arith.constant 0 : index
    %54 = vector.load %arg9[%c1, %c0_32, %c0_33] : memref<6x96x32xbf16, #tpu.memory_space<vmem>>, vector<1x96x32xbf16>
    %55 = vector.shape_cast %54 : vector<1x96x32xbf16> to vector<96x32xbf16>
    %cst_34 = arith.constant dense<0.000000e+00> : vector<16x32xf32>
    %56 = tpu.matmul %53, %55, %cst_34 {dimension_numbers = #tpu.dot_dimension_numbers<[1], [0], [0], [1], [0, 0, 1, 1], [], []>} : vector<16x96xbf16>, vector<96x32xbf16>, vector<16x32xf32> -> vector<16x32xf32>
    %c1_35 = arith.constant 1 : index
    %c0_36 = arith.constant 0 : index
    %c0_37 = arith.constant 0 : index
    %57 = vector.load %arg10[%c1_35, %c0_36, %c0_37] : memref<6x1x32xf32, #tpu.memory_space<vmem>>, vector<1x1x32xf32>
    %58 = vector.shape_cast %57 : vector<1x1x32xf32> to vector<1x32xf32>
    %59 = vector.broadcast %58 : vector<1x32xf32> to vector<16x32xf32>
    %60 = arith.addf %56, %59 : vector<16x32xf32>
    %cst_38 = arith.constant 0.000000e+00 : f32
    %61 = vector.broadcast %cst_38 : f32 to vector<16x32xf32>
    %62 = arith.maximumf %60, %61 : vector<16x32xf32>
    %63 = arith.addf %49, %62 : vector<16x32xf32>
    %cst_39 = arith.constant dense<0.000000e+00> : vector<16x32xf32>
    %64 = tpu.matmul %34, %63, %cst_39 {dimension_numbers = #tpu.dot_dimension_numbers<[1], [0], [0], [1], [0, 0, 1, 1], [], []>} : vector<16x16xf32>, vector<16x32xf32>, vector<16x32xf32> -> vector<16x32xf32>
    %cst_40 = arith.constant dense<0.000000e+00> : vector<16x32xf32>
    %65 = tpu.matmul %35, %63, %cst_40 {dimension_numbers = #tpu.dot_dimension_numbers<[1], [0], [0], [1], [0, 0, 1, 1], [], []>} : vector<16x16xf32>, vector<16x32xf32>, vector<16x32xf32> -> vector<16x32xf32>
    %66 = tpu.concatenate %64, %63, %65 in 1 : vector<16x32xf32>, vector<16x32xf32>, vector<16x32xf32> -> vector<16x96xf32>
    %67 = arith.truncf %66 : vector<16x96xf32> to vector<16x96xbf16>
    %c2 = arith.constant 2 : index
    %c0_41 = arith.constant 0 : index
    %c0_42 = arith.constant 0 : index
    %68 = vector.load %arg9[%c2, %c0_41, %c0_42] : memref<6x96x32xbf16, #tpu.memory_space<vmem>>, vector<1x96x32xbf16>
    %69 = vector.shape_cast %68 : vector<1x96x32xbf16> to vector<96x32xbf16>
    %cst_43 = arith.constant dense<0.000000e+00> : vector<16x32xf32>
    %70 = tpu.matmul %67, %69, %cst_43 {dimension_numbers = #tpu.dot_dimension_numbers<[1], [0], [0], [1], [0, 0, 1, 1], [], []>} : vector<16x96xbf16>, vector<96x32xbf16>, vector<16x32xf32> -> vector<16x32xf32>
    %c2_44 = arith.constant 2 : index
    %c0_45 = arith.constant 0 : index
    %c0_46 = arith.constant 0 : index
    %71 = vector.load %arg10[%c2_44, %c0_45, %c0_46] : memref<6x1x32xf32, #tpu.memory_space<vmem>>, vector<1x1x32xf32>
    %72 = vector.shape_cast %71 : vector<1x1x32xf32> to vector<1x32xf32>
    %73 = vector.broadcast %72 : vector<1x32xf32> to vector<16x32xf32>
    %74 = arith.addf %70, %73 : vector<16x32xf32>
    %cst_47 = arith.constant 0.000000e+00 : f32
    %75 = vector.broadcast %cst_47 : f32 to vector<16x32xf32>
    %76 = arith.maximumf %74, %75 : vector<16x32xf32>
    %77 = arith.addf %63, %76 : vector<16x32xf32>
    %cst_48 = arith.constant dense<0.000000e+00> : vector<16x32xf32>
    %78 = tpu.matmul %34, %77, %cst_48 {dimension_numbers = #tpu.dot_dimension_numbers<[1], [0], [0], [1], [0, 0, 1, 1], [], []>} : vector<16x16xf32>, vector<16x32xf32>, vector<16x32xf32> -> vector<16x32xf32>
    %cst_49 = arith.constant dense<0.000000e+00> : vector<16x32xf32>
    %79 = tpu.matmul %35, %77, %cst_49 {dimension_numbers = #tpu.dot_dimension_numbers<[1], [0], [0], [1], [0, 0, 1, 1], [], []>} : vector<16x16xf32>, vector<16x32xf32>, vector<16x32xf32> -> vector<16x32xf32>
    %80 = tpu.concatenate %78, %77, %79 in 1 : vector<16x32xf32>, vector<16x32xf32>, vector<16x32xf32> -> vector<16x96xf32>
    %81 = arith.truncf %80 : vector<16x96xf32> to vector<16x96xbf16>
    %c3 = arith.constant 3 : index
    %c0_50 = arith.constant 0 : index
    %c0_51 = arith.constant 0 : index
    %82 = vector.load %arg9[%c3, %c0_50, %c0_51] : memref<6x96x32xbf16, #tpu.memory_space<vmem>>, vector<1x96x32xbf16>
    %83 = vector.shape_cast %82 : vector<1x96x32xbf16> to vector<96x32xbf16>
    %cst_52 = arith.constant dense<0.000000e+00> : vector<16x32xf32>
    %84 = tpu.matmul %81, %83, %cst_52 {dimension_numbers = #tpu.dot_dimension_numbers<[1], [0], [0], [1], [0, 0, 1, 1], [], []>} : vector<16x96xbf16>, vector<96x32xbf16>, vector<16x32xf32> -> vector<16x32xf32>
    %c3_53 = arith.constant 3 : index
    %c0_54 = arith.constant 0 : index
    %c0_55 = arith.constant 0 : index
    %85 = vector.load %arg10[%c3_53, %c0_54, %c0_55] : memref<6x1x32xf32, #tpu.memory_space<vmem>>, vector<1x1x32xf32>
    %86 = vector.shape_cast %85 : vector<1x1x32xf32> to vector<1x32xf32>
    %87 = vector.broadcast %86 : vector<1x32xf32> to vector<16x32xf32>
    %88 = arith.addf %84, %87 : vector<16x32xf32>
    %cst_56 = arith.constant 0.000000e+00 : f32
    %89 = vector.broadcast %cst_56 : f32 to vector<16x32xf32>
    %90 = arith.maximumf %88, %89 : vector<16x32xf32>
    %91 = arith.addf %77, %90 : vector<16x32xf32>
    %cst_57 = arith.constant dense<0.000000e+00> : vector<16x32xf32>
    %92 = tpu.matmul %34, %91, %cst_57 {dimension_numbers = #tpu.dot_dimension_numbers<[1], [0], [0], [1], [0, 0, 1, 1], [], []>} : vector<16x16xf32>, vector<16x32xf32>, vector<16x32xf32> -> vector<16x32xf32>
    %cst_58 = arith.constant dense<0.000000e+00> : vector<16x32xf32>
    %93 = tpu.matmul %35, %91, %cst_58 {dimension_numbers = #tpu.dot_dimension_numbers<[1], [0], [0], [1], [0, 0, 1, 1], [], []>} : vector<16x16xf32>, vector<16x32xf32>, vector<16x32xf32> -> vector<16x32xf32>
    %94 = tpu.concatenate %92, %91, %93 in 1 : vector<16x32xf32>, vector<16x32xf32>, vector<16x32xf32> -> vector<16x96xf32>
    %95 = arith.truncf %94 : vector<16x96xf32> to vector<16x96xbf16>
    %c4 = arith.constant 4 : index
    %c0_59 = arith.constant 0 : index
    %c0_60 = arith.constant 0 : index
    %96 = vector.load %arg9[%c4, %c0_59, %c0_60] : memref<6x96x32xbf16, #tpu.memory_space<vmem>>, vector<1x96x32xbf16>
    %97 = vector.shape_cast %96 : vector<1x96x32xbf16> to vector<96x32xbf16>
    %cst_61 = arith.constant dense<0.000000e+00> : vector<16x32xf32>
    %98 = tpu.matmul %95, %97, %cst_61 {dimension_numbers = #tpu.dot_dimension_numbers<[1], [0], [0], [1], [0, 0, 1, 1], [], []>} : vector<16x96xbf16>, vector<96x32xbf16>, vector<16x32xf32> -> vector<16x32xf32>
    %c4_62 = arith.constant 4 : index
    %c0_63 = arith.constant 0 : index
    %c0_64 = arith.constant 0 : index
    %99 = vector.load %arg10[%c4_62, %c0_63, %c0_64] : memref<6x1x32xf32, #tpu.memory_space<vmem>>, vector<1x1x32xf32>
    %100 = vector.shape_cast %99 : vector<1x1x32xf32> to vector<1x32xf32>
    %101 = vector.broadcast %100 : vector<1x32xf32> to vector<16x32xf32>
    %102 = arith.addf %98, %101 : vector<16x32xf32>
    %cst_65 = arith.constant 0.000000e+00 : f32
    %103 = vector.broadcast %cst_65 : f32 to vector<16x32xf32>
    %104 = arith.maximumf %102, %103 : vector<16x32xf32>
    %105 = arith.addf %91, %104 : vector<16x32xf32>
    %cst_66 = arith.constant dense<0.000000e+00> : vector<16x32xf32>
    %106 = tpu.matmul %34, %105, %cst_66 {dimension_numbers = #tpu.dot_dimension_numbers<[1], [0], [0], [1], [0, 0, 1, 1], [], []>} : vector<16x16xf32>, vector<16x32xf32>, vector<16x32xf32> -> vector<16x32xf32>
    %cst_67 = arith.constant dense<0.000000e+00> : vector<16x32xf32>
    %107 = tpu.matmul %35, %105, %cst_67 {dimension_numbers = #tpu.dot_dimension_numbers<[1], [0], [0], [1], [0, 0, 1, 1], [], []>} : vector<16x16xf32>, vector<16x32xf32>, vector<16x32xf32> -> vector<16x32xf32>
    %108 = tpu.concatenate %106, %105, %107 in 1 : vector<16x32xf32>, vector<16x32xf32>, vector<16x32xf32> -> vector<16x96xf32>
    %109 = arith.truncf %108 : vector<16x96xf32> to vector<16x96xbf16>
    %c5 = arith.constant 5 : index
    %c0_68 = arith.constant 0 : index
    %c0_69 = arith.constant 0 : index
    %110 = vector.load %arg9[%c5, %c0_68, %c0_69] : memref<6x96x32xbf16, #tpu.memory_space<vmem>>, vector<1x96x32xbf16>
    %111 = vector.shape_cast %110 : vector<1x96x32xbf16> to vector<96x32xbf16>
    %cst_70 = arith.constant dense<0.000000e+00> : vector<16x32xf32>
    %112 = tpu.matmul %109, %111, %cst_70 {dimension_numbers = #tpu.dot_dimension_numbers<[1], [0], [0], [1], [0, 0, 1, 1], [], []>} : vector<16x96xbf16>, vector<96x32xbf16>, vector<16x32xf32> -> vector<16x32xf32>
    %c5_71 = arith.constant 5 : index
    %c0_72 = arith.constant 0 : index
    %c0_73 = arith.constant 0 : index
    %113 = vector.load %arg10[%c5_71, %c0_72, %c0_73] : memref<6x1x32xf32, #tpu.memory_space<vmem>>, vector<1x1x32xf32>
    %114 = vector.shape_cast %113 : vector<1x1x32xf32> to vector<1x32xf32>
    %115 = vector.broadcast %114 : vector<1x32xf32> to vector<16x32xf32>
    %116 = arith.addf %112, %115 : vector<16x32xf32>
    %cst_74 = arith.constant 0.000000e+00 : f32
    %117 = vector.broadcast %cst_74 : f32 to vector<16x32xf32>
    %118 = arith.maximumf %116, %117 : vector<16x32xf32>
    %119 = arith.addf %105, %118 : vector<16x32xf32>
    %120 = vector.broadcast %1 : vector<16x1xf32> to vector<16x32xf32>
    %121 = arith.mulf %119, %120 : vector<16x32xf32>
    %c0_75 = arith.constant 0 : index
    %c0_76 = arith.constant 0 : index
    %122 = vector.load %arg4[%c0_75, %c0_76] : memref<2x16xf32, #tpu.memory_space<vmem>>, vector<2x16xf32>
    %cst_77 = arith.constant dense<0.000000e+00> : vector<2x32xf32>
    %123 = tpu.matmul %122, %121, %cst_77 {dimension_numbers = #tpu.dot_dimension_numbers<[1], [0], [0], [1], [0, 0, 1, 1], [], []>} : vector<2x16xf32>, vector<16x32xf32>, vector<2x32xf32> -> vector<2x32xf32>
    %c0_78 = arith.constant 0 : index
    %c0_79 = arith.constant 0 : index
    %124 = vector.load %arg4[%c0_78, %c0_79] : memref<2x16xf32, #tpu.memory_space<vmem>>, vector<2x16xf32>
    %cst_80 = arith.constant dense<0.000000e+00> : vector<2x1xf32>
    %125 = tpu.matmul %124, %1, %cst_80 {dimension_numbers = #tpu.dot_dimension_numbers<[1], [0], [0], [1], [0, 0, 1, 1], [], []>} : vector<2x16xf32>, vector<16x1xf32>, vector<2x1xf32> -> vector<2x1xf32>
    %cst_81 = arith.constant 1.000000e+00 : f32
    %126 = vector.broadcast %cst_81 : f32 to vector<2x1xf32>
    %127 = arith.maximumf %125, %126 : vector<2x1xf32>
    %128 = tpu.reciprocal %127 {approx = true} : vector<2x1xf32> -> vector<2x1xf32>
    %129 = vector.broadcast %128 : vector<2x1xf32> to vector<2x32xf32>
    %130 = arith.mulf %123, %129 : vector<2x32xf32>
    %c0_82 = arith.constant 0 : index
    %c0_83 = arith.constant 0 : index
    %131 = vector.load %arg11[%c0_82, %c0_83] : memref<32x1xf32, #tpu.memory_space<vmem>>, vector<32x1xf32>
    %cst_84 = arith.constant dense<0.000000e+00> : vector<2x1xf32>
    %132 = tpu.matmul %130, %131, %cst_84 {dimension_numbers = #tpu.dot_dimension_numbers<[1], [0], [0], [1], [0, 0, 1, 1], [], []>} : vector<2x32xf32>, vector<32x1xf32>, vector<2x1xf32> -> vector<2x1xf32>
    %c0_85 = arith.constant 0 : index
    %c0_86 = arith.constant 0 : index
    %133 = vector.load %arg12[%c0_85, %c0_86] : memref<1x1xf32, #tpu.memory_space<vmem>>, vector<1x1xf32>
    %134 = vector.broadcast %133 : vector<1x1xf32> to vector<2x1xf32>
    %135 = arith.addf %132, %134 : vector<2x1xf32>
    %c0_87 = arith.constant 0 : index
    %c0_88 = arith.constant 0 : index
    %136 = vector.load %arg15[%c0_87, %c0_88] : memref<2x1xf32, #tpu.memory_space<vmem>>, vector<2x1xf32>
    tpu.vector_store %arg15[%c0_87, %c0_88], %135 {strides = array<i32>} : memref<2x1xf32, #tpu.memory_space<vmem>>, vector<2x1xf32>,
    %c0_89 = arith.constant 0 : index
    %c0_90 = arith.constant 0 : index
    %137 = vector.load %arg13[%c0_89, %c0_90] : memref<1x1xf32, #tpu.memory_space<vmem>>, vector<1x1xf32>
    %138 = vector.broadcast %137 : vector<1x1xf32> to vector<2x1xf32>
    %139 = arith.mulf %135, %138 : vector<2x1xf32>
    %c0_91 = arith.constant 0 : index
    %c0_92 = arith.constant 0 : index
    %140 = vector.load %arg14[%c0_91, %c0_92] : memref<1x1xf32, #tpu.memory_space<vmem>>, vector<1x1xf32>
    %141 = vector.broadcast %140 : vector<1x1xf32> to vector<2x1xf32>
    %142 = arith.addf %139, %141 : vector<2x1xf32>
    %c0_93 = arith.constant 0 : index
    %c0_94 = arith.constant 0 : index
    %143 = vector.load %arg16[%c0_93, %c0_94] : memref<2x1xf32, #tpu.memory_space<vmem>>, vector<2x1xf32>
    tpu.vector_store %arg16[%c0_93, %c0_94], %142 {strides = array<i32>} : memref<2x1xf32, #tpu.memory_space<vmem>>, vector<2x1xf32>,
    return
  }
}

</mosaic_0001>

<bundles_post_ra>
// kernel: forward.3
= control target key start
LH: loop header
LB: loop body
LE: loop exit
PB: predicated region body
PF: predicated region fallthrough
CT: control target
= control target key end

     0   :  { %s1944_s29 = smov 0   ;;  %s2140_s0 = inlined_call_operand.vmem [shape: f32[2,8,32], index: 0, kind: input, shape index: {}]   ;;  %s2141_s1 = inlined_call_operand.vmem [shape: f32[2,1,8], index: 1, kind: input, shape index: {}]   ;;  %s2142_s2 = inlined_call_operand.vmem [shape: f32[1,32], index: 2, kind: input, shape index: {}]   ;;  %s2143_s3 = inlined_call_operand.vmem [shape: f32[1,32], index: 3, kind: input, shape index: {}]   ;;  %s2144_s4 = inlined_call_operand.vmem [shape: bf16[32,96], index: 4, kind: input, shape index: {}]   ;;  %s2145_s5 = inlined_call_operand.vmem [shape: f32[1,96], index: 5, kind: input, shape index: {}]   ;;  %s2146_s6 = inlined_call_operand.vmem [shape: bf16[32,32], index: 6, kind: input, shape index: {}]   ;;  %s2147_s7 = inlined_call_operand.vmem [shape: f32[1,32], index: 7, kind: input, shape index: {}]   ;;  %s2148_s8 = inlined_call_operand.vmem [shape: f32[1,32], index: 8, kind: input, shape index: {}]   ;;  %s2149_s9 = inlined_call_operand.vmem [shape: f32[1,32], index: 9, kind: input, shape index: {}]   ;;  %s2150_s10 = inlined_call_operand.vmem [shape: bf16[32,128], index: 10, kind: input, shape index: {}]   ;;  %s2151_s11 = inlined_call_operand.vmem [shape: f32[1,128], index: 11, kind: input, shape index: {}]   ;;  %s2152_s12 = inlined_call_operand.vmem [shape: bf16[128,32], index: 12, kind: input, shape index: {}]   ;;  %s2153_s13 = inlined_call_operand.vmem [shape: f32[1,32], index: 13, kind: input, shape index: {}]   ;;  %s2154_s14 = inlined_call_operand.vmem [shape: f32[2,8,32], index: 14, kind: output, shape index: {}]  }
   0x1 LB: > { %s1620_s30 = sadd.s32 4294967295, %s1851_s29   ;;  %p1624_p0 = scmp.ge.s32.totalorder %s1851_s29, 1  ;;  %s1851_s29 = sphi %s1944_s29, %s24_s29  }
   0x2   : > { %p419_p1 = scmp.lt.s32.totalorder %s1851_s29, 3 }
   0x4   : > { %p420_p2 = pnand %p1624_p0, %p419_p1 }
   0x5   : > { %p466_p3 = scmp.lt.s32.totalorder (!%p420_p2), %s1620_s30, 1  ;;  %vm480_vm0 = vcmask (!%p420_p2), 261120   ;;  %v1809_v7 = vld [vmem:[%s2144_s4] sm:$0xff] (!%p420_p2)   ;;  %v1853_v8 = vmov (!%p420_p2), 0.0   ;;  %vm1854_vm1 = vmmov (!%p420_p2), 0   ;;  %v1810_v9 = vld [vmem:[%s2144_s4 + $0x8] sm:$0xff] (!%p420_p2)  }
   0x6   : > { %423 = sbr.rel (%p420_p2) target bundleno = 3057 (0xbf1), region = 76  ;;  %1701 = vmatprep.subr.bf16.mxu0 (!%p420_p2), %v1853_v8  ;;  %1705 = vmatprep.mubr.msk.bf16.mxu0 (!%p420_p2), %vm1854_vm1, %v1853_v8  ;;  %v1627_v14 = vld [vmem:[%s2142_s2] ss:$0 sm:$0xff] (!%p420_p2)  ;;  %s1855_s16 = smov (!%p420_p2), 64   ;;  %vm581_vm2 = vcmask (!%p420_p2), 64512   ;;  %vm1265_vm3 = vcmask (!%p420_p2), 130048  }
   0x7   : > { %1702 = vmatpush3.bf16.msra.mxu0 (!%p420_p2), %v1809_v7  ;;  %1714 = vmatprep.subr.mxu1 (!%p420_p2), %v1853_v8  ;;  %v1628_v16 = vld [vmem:[%s2143_s3] ss:$0 sm:$0xff] (!%p420_p2)  ;;  %s1856_s17 = smov (!%p420_p2), 96   ;;  %s1858_s19 = smov (!%p420_p2), 120   ;;  %vm1267_vm4 = vcmask (!%p420_p2), 195584  }
   0x8   : > { %1703 = vmatprep.subr.bf16.mxu0 (!%p420_p2), %v1853_v8  ;;  %1716 = vmatprep.mubr.msk.f32.mxu1 (!%p420_p2), %vm1854_vm1, %v1853_v8  ;;  %v1629_v20 = vld [vmem:[%s2145_s5] ss:$0 sm:$0xff] (!%p420_p2)  ;;  %s1859_s23 = smov (!%p420_p2), 80   ;;  %s1860_s24 = smov (!%p420_p2), 112  }
   0x9   : > { %s1861_s25 = smov (!%p420_p2), 72   ;;  %s1862_s26 = smov (!%p420_p2), 104  }
   0xa   : > { %s1863_s27 = smov (!%p420_p2), 48   ;;  %s1864_s28 = smov (!%p420_p2), 40  }
   0xb   : > { %1704 = vmatpush3.bf16.msra.mxu0 (!%p420_p2), %v1810_v9  ;;  %s1866_s21 = smov (!%p420_p2), 8  }
   0xc   : > { %1709 = vmatprep.subr.mxu0 (!%p420_p2), %v1853_v8 }
   0xd   : > { %s2156_s30 = smov (!%p466_p3, %s1620_s30), 1 }
   0xe   : > { %s1625_s15 = sshll.u32 %s2156_s30, 3  ;;  %s472_s22 = scalar_lea.vmem %s2141_s1, %s2156_s30 }
   0xf   : > { %s469_s18 = scalar_lea.vmem %s2140_s0, %s1625_s15  ;;  %v1635_v29 = vld [vmem:[%s472_s22] ss:$0 sm:$0xff]  ;;  %s1867_s22 = smov 16  }
  0x10   : > { %v1960_v0 = vld [vmem:[%s469_s18] sm:$0xff]  ;;  %s1857_s18 = smov 88  }
  0x11   : > { %v481_v1 = vsel %vm480_vm0, %v1960_v0, 0.0 }
  0x12   : > { %482 = vadd.xlane.f32.xlu0 %v481_v1 }
  0x9f   : > { %v483_v2 = vpop.xlane.xlu0 %482 }
  0xa0   : > { %v485_v3 = vmul.f32 0.03125, %v483_v2 }
  0xa2   : > { %v486_v4 = vsub.f32 %v1960_v0, %v485_v3 }
  0xa4   : > { %v487_v5 = vmul.f32 %v486_v4, %v486_v4 }
  0xa6   : > { %v488_v6 = vsel %vm480_vm0, %v487_v5, 0.0 }
  0xa7   : > { %489 = vadd.xlane.f32.xlu0 %v488_v6 }
 0x134   : > { %v490_v10 = vpop.xlane.xlu0 %489 }
 0x135   : > { %v491_v11 = vmul.f32 0.03125, %v490_v10 }
 0x137   : > { %v492_v12 = vadd.f32 1e-05, %v491_v11 }
 0x139   : > { %1823 = vrsqrt.f32 %v492_v12 }
 0x143   : > { %v1824_v13 = vpop.eup %1823 }
 0x144   : > { %v494_v15 = vmul.f32 %v1824_v13, %v486_v4 }
 0x146   : > { %v502_v17 = vmul.f32 %v1627_v14, %v494_v15 }
 0x148   : > { %v510_v18 = vadd.f32 %v1628_v16, %v502_v17 }
 0x14a   : > { %v511_v19 = vpack.c.bf16 %v510_v18, %v510_v18 }
 0x14c   : > { %1706 = vmatmul.mubr.msk.bf16.vlgmr.msra.gmra.mrb[0].mxu0 %vm480_vm0, %v511_v19 }
 0x14d   : > { %1711 = vmatprep.mubr.msk.f32.mxu0 %vm1854_vm1, %v1853_v8 }
 0x21f   : > { %v572_v21 = vpop.f32.mrb[0].mxu0 }
 0x220   : > { %v1992_v22 = vadd.f32 %v1629_v20, %v572_v21  ;;  %v1707_v23 = vpop.f32.mrb[1].mxu0 }
 0x221   : > { %v575_v24 = vpop.f32.mrb[2].mxu0 }
 0x222   : > { %675 = vrot.lane.b32.xlu0 %v1992_v22, %s1855_s16  ;;  %579 = vrot.lane.b32.xlu1 %v1992_v22, %s1856_s17  ;;  %v1708_v25 = vpop.f32.mrb[3].mxu0  ;;  %s1865_s16 = smov 56   ;;  %s476_s17 = scalar_lea.vmem %s2154_s14, %s1625_s15 }
 0x226   : > { %753 = vrot.lane.b32.xlu0 %v1992_v22, %s1857_s18 }
 0x22a   : > { %751 = vrot.lane.b32.xlu0 %v1992_v22, %s1858_s19 }
 0x294   : > { %v676_v26 = vpop.permute.xlu0 %675  ;;  %v580_v27 = vpop.permute.xlu1 %579 }
 0x295   : > { %1710 = vmatpush3.xpose.msk.msra.mxu0 %vm581_vm2, %v580_v27  ;;  %1715 = vmatpush3.msra.mxu1 %v676_v26 }
 0x296   : > { %1719 = vmatprep.subr.mxu1 %v1853_v8  ;;  %1724 = vmatprep.subr.mxu0 %v1853_v8 }
 0x298   : > { %1712 = vmatmul.mubr.msk.f32.vlgmr.msra.gmra.mrb[4].mxu0 %vm581_vm2, %v1992_v22  ;;  %v754_v39 = vpop.permute.xlu0 %753 }
 0x299   : > { %1726 = vmatprep.mubr.msk.f32.mxu0 %vm1854_vm1, %v1853_v8 }
 0x29c   : > { %v752_v40 = vpop.permute.xlu0 %751 }
 0x36b   : > { %v652_v28 = vpop.f32.mrb[4].mxu0 }
 0x36c   : > { %v656_v30 = vmul.f32 0.35355338, %v652_v28  ;;  %v1713_v31 = vpop.f32.mrb[5].mxu0 }
 0x36d   : > { %v1812_v31 = vld [vmem:[%s2146_s6 + $0x8] sm:$0xff]  }
 0x36e   : > { %v663_v32 = vadd.f32 %v1635_v29, %v656_v30  ;;  %v1811_v30 = vld [vmem:[%s2146_s6] sm:$0xff]  }
 0x370   : > { %v664_v33 = vsel %vm581_vm2, %v663_v32, -inf }
 0x371   : > { %665 = vmax.xlane.f32.xlu1 %v664_v33 }
 0x382   : > { %920 = vrot.lane.b32.xlu1 %v1992_v22, %s1859_s23  ;;  %s1868_s23 = smov 24  }
 0x3fe   : > { %v666_v34 = vpop.xlane.xlu1 %665 }
 0x3ff   : > { %v667_v35 = vsub.f32 %v663_v32, %v666_v34 }
 0x401   : > { %v668_v36 = vmul.f32 1.442695, %v667_v35 }
 0x402   : > { %v921_v45 = vpop.permute.xlu1 %920 }
 0x403   : > { %1825 = vpow2.f32 %v668_v36 }
 0x40d   : > { %v1826_v37 = vpop.eup %1825 }
 0x40e   : > { %v670_v38 = vsel %vm581_vm2, %v1826_v37, 0.0 }
 0x40f   : > { %671 = vadd.xlane.f32.xlu0 %v670_v38 }
 0x425   : > { %918 = vrot.lane.b32.xlu0 %v1992_v22, %s1860_s24 }
 0x429   : > { %1087 = vrot.lane.b32.xlu0 %v1992_v22, %s1861_s25 }
 0x42d   : > { %1085 = vrot.lane.b32.xlu0 %v1992_v22, %s1862_s26 }
 0x49c   : > { %v672_v41 = vpop.xlane.xlu0 %671 }
 0x49d   : > { %1827 = vrcp.f32 %v672_v41 }
 0x4a0   : > { %v919_v44 = vpop.permute.xlu0 %918 }
 0x4a4   : > { %v1088_v46 = vpop.permute.xlu0 %1087 }
 0x4a7   : > { %v1828_v42 = vpop.eup %1827 }
 0x4a8   : > { %v674_v43 = vmul.f32 %v1828_v42, %v1826_v37  ;;  %v1086_v47 = vpop.permute.xlu0 %1085 }
 0x4aa   : > { %1717 = vmatmul.mubr.msk.f32.vlgmr.msra.gmra.mrb[0].mxu1 %vm581_vm2, %v674_v43 }
 0x4ab   : > { %1720 = vmatpush3.xpose.msk.msra.mxu1 %vm581_vm2, %v754_v39  ;;  %1721 = vmatprep.mubr.msk.f32.mxu1 %vm1854_vm1, %v1853_v8 }
 0x4ac   : > { %1729 = vmatprep.subr.mxu1 %v1853_v8 }
 0x4ae   : > { %1722 = vmatmul.mubr.msk.f32.vlgmr.msra.gmra.mrb[2].mxu1 %vm581_vm2, %v752_v40 }
 0x4af   : > { %1730 = vmatpush3.xpose.msk.msra.mxu1 %vm581_vm2, %v921_v45  ;;  %1731 = vmatprep.mubr.msk.f32.mxu1 %vm1854_vm1, %v1853_v8 }
 0x4b0   : > { %1739 = vmatprep.subr.mxu1 %v1853_v8 }
 0x4b2   : > { %1732 = vmatmul.mubr.msk.f32.vlgmr.msra.gmra.mrb[4].mxu1 %vm581_vm2, %v919_v44 }
 0x4b3   : > { %1740 = vmatpush3.xpose.msk.msra.mxu1 %vm581_vm2, %v1088_v46  ;;  %1741 = vmatprep.mubr.msk.f32.mxu1 %vm1854_vm1, %v1853_v8  ;;  %v1649_v46 = vld [vmem:[%s2147_s7] ss:$0 sm:$0xff] }
 0x4b4   : > { %1765 = vmatprep.subr.bf16.mxu1 %v1853_v8 }
 0x4b6   : > { %1742 = vmatmul.mubr.msk.f32.vlgmr.msra.gmra.mrb[6].mxu1 %vm581_vm2, %v1086_v47 }
 0x4b7   : > { %1781 = vmatprep.mubr.msk.bf16.mxu1 %vm1854_vm1, %v1853_v8 }
 0x57d   : > { %v2033_v48 = vpop.f32.mrb[0].mxu1 }
 0x57e   : > { %v1718_v49 = vpop.f32.mrb[1].mxu1 }
 0x581   : > { %v825_v50 = vpop.f32.mrb[2].mxu1 }
 0x582   : > { %v829_v51 = vmul.f32 0.35355338, %v825_v50  ;;  %v1723_v52 = vpop.f32.mrb[3].mxu1 }
 0x584   : > { %v830_v53 = vadd.f32 %v1635_v29, %v829_v51 }
 0x585   : > { %v992_v54 = vpop.f32.mrb[4].mxu1 }
 0x586   : > { %v996_v55 = vmul.f32 0.35355338, %v992_v54  ;;  %v1733_v56 = vpop.f32.mrb[5].mxu1  ;;  %v831_v57 = vsel %vm581_vm2, %v830_v53, -inf }
 0x587   : > { %832 = vmax.xlane.f32.xlu0 %v831_v57 }
 0x588   : > { %v997_v58 = vadd.f32 %v1635_v29, %v996_v55 }
 0x589   : > { %v1159_v59 = vpop.f32.mrb[6].mxu1 }
 0x58a   : > { %v1163_v60 = vmul.f32 0.35355338, %v1159_v59  ;;  %v1743_v61 = vpop.f32.mrb[7].mxu1  ;;  %v998_v62 = vsel %vm581_vm2, %v997_v58, -inf }
 0x58b   : > { %999 = vmax.xlane.f32.xlu1 %v998_v62 }
 0x58c   : > { %v1164_v63 = vadd.f32 %v1635_v29, %v1163_v60 }
 0x58e   : > { %v1165_v1 = vsel %vm581_vm2, %v1164_v63, -inf }
 0x58f   : > { %1166 = vmax.xlane.f32.xlu0 %v1165_v1 }
 0x59c   : > { %1009 = vrot.lane.b32.xlu1 %v1992_v22, %s1863_s27 }
 0x614   : > { %v833_v2 = vpop.xlane.xlu0 %832 }
 0x615   : > { %v834_v3 = vsub.f32 %v830_v53, %v833_v2  ;;  %v1651_v2 = vld [vmem:[%s2149_s9] ss:$0 sm:$0xff] }
 0x617   : > { %v835_v4 = vmul.f32 1.442695, %v834_v3 }
 0x618   : > { %v1000_v5 = vpop.xlane.xlu1 %999 }
 0x619   : > { %1829 = vpow2.f32 %v835_v4  ;;  %v1001_v6 = vsub.f32 %v997_v58, %v1000_v5  ;;  %v1814_v58 = vld [vmem:[%s2150_s10 + $0x8] sm:$0xff]  }
 0x61b   : > { %v1002_v7 = vmul.f32 1.442695, %v1001_v6  ;;  %v1815_v6 = vld [vmem:[%s2152_s12] sm:$0xff]  }
 0x61c   : > { %v1167_v9 = vpop.xlane.xlu0 %1166  ;;  %v1010_v19 = vpop.permute.xlu1 %1009  ;;  %1766 = vmatpush3.bf16.msra.mxu1 %v1815_v6 }
 0x61d   : > { %1831 = vpow2.f32 %v1002_v7  ;;  %v1168_v10 = vsub.f32 %v1164_v63, %v1167_v9  ;;  %v1650_v63 = vld [vmem:[%s2148_s8] ss:$0 sm:$0xff]  ;;  %1767 = vmatprep.subr.bf16.mxu1 %v1853_v8  ;;  %v1816_v7 = vld [vmem:[%s2152_s12 + $0x8] sm:$0xff]   ;;  %v1817_v9 = vld [vmem:[%s2152_s12 + $0x10] sm:$0xff]  }
 0x61f   : > { %v1169_v11 = vmul.f32 1.442695, %v1168_v10  ;;  %v1818_v10 = vld [vmem:[%s2152_s12 + $0x18] sm:$0xff]  }
 0x620   : > { %1768 = vmatpush3.bf16.msra.mxu1 %v1816_v7 }
 0x621   : > { %1833 = vpow2.f32 %v1169_v11  ;;  %1769 = vmatprep.subr.bf16.mxu1 %v1853_v8  ;;  %v1819_v11 = vld [vmem:[%s2152_s12 + $0x20] sm:$0xff]  }
 0x623   : > { %v1830_v12 = vpop.eup %1829 }
 0x624   : > { %v837_v13 = vsel %vm581_vm2, %v1830_v12, 0.0  ;;  %1770 = vmatpush3.bf16.msra.mxu1 %v1817_v9 }
 0x625   : > { %838 = vadd.xlane.f32.xlu0 %v837_v13  ;;  %1771 = vmatprep.subr.bf16.mxu1 %v1853_v8  ;;  %v1821_v13 = vld [vmem:[%s2152_s12 + $0x30] sm:$0xff]  }
 0x627   : > { %v1832_v14 = vpop.eup %1831 }
 0x628   : > { %v1004_v15 = vsel %vm581_vm2, %v1832_v14, 0.0  ;;  %1772 = vmatpush3.bf16.msra.mxu1 %v1818_v10 }
 0x629   : > { %1005 = vadd.xlane.f32.xlu0 %v1004_v15  ;;  %1773 = vmatprep.subr.bf16.mxu1 %v1853_v8  ;;  %v1652_v15 = vld [vmem:[%s2151_s11] ss:$0 sm:$0xff] }
 0x62b   : > { %v1834_v16 = vpop.eup %1833 }
 0x62c   : > { %v1171_v17 = vsel %vm581_vm2, %v1834_v16, 0.0  ;;  %1774 = vmatpush3.bf16.msra.mxu1 %v1819_v11 }
 0x62d   : > { %1172 = vadd.xlane.f32.xlu1 %v1171_v17  ;;  %1775 = vmatprep.subr.bf16.mxu1 %v1853_v8 }
 0x63e   : > { %1176 = vrot.lane.b32.xlu1 %v1992_v22, %s1864_s28 }
 0x63f   : > { %842 = vrot.lane.b32.xlu0 %v1992_v22, %s1865_s16 }
 0x6b2   : > { %v839_v18 = vpop.xlane.xlu0 %838 }
 0x6b3   : > { %1835 = vrcp.f32 %v839_v18 }
 0x6b6   : > { %v1006_v20 = vpop.xlane.xlu0 %1005 }
 0x6b7   : > { %1837 = vrcp.f32 %v1006_v20 }
 0x6ba   : > { %v1173_v21 = vpop.xlane.xlu1 %1172  ;;  %v843_v23 = vpop.permute.xlu0 %842 }
 0x6bb   : > { %1839 = vrcp.f32 %v1173_v21  ;;  %1725 = vmatpush3.msra.mxu0 %v843_v23 }
 0x6bc   : > { %1734 = vmatprep.subr.mxu0 %v1853_v8 }
 0x6bd   : > { %v1836_v24 = vpop.eup %1835 }
 0x6be   : > { %v841_v25 = vmul.f32 %v1836_v24, %v1830_v12  ;;  %v1177_v27 = vpop.permute.xlu1 %1176  ;;  %v1820_v12 = vld [vmem:[%s2152_s12 + $0x28] sm:$0xff]  }
 0x6bf   : > { %1776 = vmatpush3.bf16.msra.mxu1 %v1820_v12 }
 0x6c0   : > { %1727 = vmatmul.mubr.msk.f32.vlgmr.msra.gmra.mrb[6].mxu0 %vm581_vm2, %v841_v25  ;;  %1777 = vmatprep.subr.bf16.mxu1 %v1853_v8 }
 0x6c1   : > { %v1838_v26 = vpop.eup %1837  ;;  %1735 = vmatpush3.msra.mxu0 %v1010_v19  ;;  %1736 = vmatprep.mubr.msk.f32.mxu0 %vm1854_vm1, %v1853_v8 }
 0x6c2   : > { %v1008_v22 = vmul.f32 %v1838_v26, %v1832_v14  ;;  %1744 = vmatprep.subr.mxu0 %v1853_v8  ;;  %v1822_v14 = vld [vmem:[%s2152_s12 + $0x38] sm:$0xff]  }
 0x6c3   : > { %1778 = vmatpush3.bf16.msra.mxu1 %v1821_v13 }
 0x6c4   : > { %1737 = vmatmul.mubr.msk.f32.vlgmr.msra.gmra.mrb[8].mxu0 %vm581_vm2, %v1008_v22  ;;  %1779 = vmatprep.subr.bf16.mxu1 %v1853_v8 }
 0x6c5   : > { %v1840_v28 = vpop.eup %1839  ;;  %1745 = vmatpush3.msra.mxu0 %v1177_v27  ;;  %1746 = vmatprep.mubr.msk.f32.mxu0 %vm1854_vm1, %v1853_v8 }
 0x6c6   : > { %v1175_v29 = vmul.f32 %v1840_v28, %v1834_v16  ;;  %1749 = vmatprep.subr.bf16.mxu0 %v1853_v8 }
 0x6c7   : > { %1780 = vmatpush3.bf16.msra.mxu1 %v1822_v14 }
 0x6c8   : > { %1747 = vmatmul.mubr.msk.f32.vlgmr.msra.gmra.mrb[10].mxu0 %vm581_vm2, %v1175_v29 }
 0x6c9   : > { %1753 = vmatprep.mubr.msk.bf16.mxu0 %vm1854_vm1, %v1853_v8  ;;  %1750 = vmatpush3.bf16.msra.mxu0 %v1811_v30 }
 0x6ca   : > { %1751 = vmatprep.subr.bf16.mxu0 %v1853_v8 }
 0x6cd   : > { %1752 = vmatpush3.bf16.msra.mxu0 %v1812_v31  ;;  %v1664_v31 = vld [vmem:[%s2153_s13] ss:$0 sm:$0xff] }
 0x6ce   : > { %1757 = vmatprep.subr.bf16.mxu0 %v1853_v8 }
 0x793   : > { %v914_v32 = vpop.f32.mrb[6].mxu0 }
 0x794   : > { %1253 = vrot.lane.b32.xlu1 %v914_v32, %s1866_s21  ;;  %v1728_v33 = vpop.f32.mrb[7].mxu0 }
 0x797   : > { %v1081_v34 = vpop.f32.mrb[8].mxu0 }
 0x798   : > { %1257 = vrot.lane.b32.xlu0 %v1081_v34, %s1867_s22  ;;  %v1738_v35 = vpop.f32.mrb[9].mxu0 }
 0x79b   : > { %v1248_v36 = vpop.f32.mrb[10].mxu0 }
 0x79c   : > { %1261 = vrot.lane.b32.xlu1 %v1248_v36, %s1868_s23  ;;  %v1748_v37 = vpop.f32.mrb[11].mxu0 }
 0x806   : > { %v1254_v38 = vpop.permute.xlu1 %1253 }
 0x807   : > { %v1264_v40 = vsel %vm581_vm2, %v2033_v48, %v1254_v38 }
 0x80a   : > { %v1258_v39 = vpop.permute.xlu0 %1257 }
 0x80b   : > { %v1266_v41 = vsel %vm1265_vm3, %v1264_v40, %v1258_v39 }
 0x80e   : > { %v1262_v42 = vpop.permute.xlu1 %1261 }
 0x80f   : > { %v1268_v43 = vsel %vm1267_vm4, %v1266_v41, %v1262_v42 }
 0x810   : > { %v1269_v44 = vpack.c.bf16 %v1268_v43, %v1268_v43 }
 0x812   : > { %1754 = vmatmul.mubr.msk.bf16.vlgmr.msra.gmra.mrb[12].mxu0 %vm480_vm0, %v1269_v44 }
 0x813   : > { %1761 = vmatprep.mubr.msk.bf16.mxu0 %vm1854_vm1, %v1853_v8 }
 0x8e5   : > { %v1323_v45 = vpop.f32.mrb[12].mxu0 }
 0x8e6   : > { %v1329_v47 = vadd.f32 %v1323_v45, %v1960_v0  ;;  %v1755_v49 = vpop.f32.mrb[13].mxu0  ;;  %v1813_v0 = vld [vmem:[%s2150_s10] sm:$0xff]  }
 0x8e7   : > { %v1326_v50 = vpop.f32.mrb[14].mxu0  ;;  %1758 = vmatpush3.bf16.msra.mxu0 %v1813_v0 }
 0x8e8   : > { %v2073_v51 = vadd.f32 %v1649_v46, %v1329_v47  ;;  %v1756_v48 = vpop.f32.mrb[15].mxu0  ;;  %1759 = vmatprep.subr.bf16.mxu0 %v1853_v8 }
 0x8ea   : > { %v1338_v52 = vsel %vm480_vm0, %v2073_v51, 0.0 }
 0x8eb   : > { %1339 = vadd.xlane.f32.xlu0 %v1338_v52  ;;  %1760 = vmatpush3.bf16.msra.mxu0 %v1814_v58 }
 0x978   : > { %v1340_v53 = vpop.xlane.xlu0 %1339 }
 0x979   : > { %v1341_v54 = vmul.f32 0.03125, %v1340_v53 }
 0x97b   : > { %v1342_v55 = vsub.f32 %v2073_v51, %v1341_v54 }
 0x97d   : > { %v1343_v56 = vmul.f32 %v1342_v55, %v1342_v55 }
 0x97f   : > { %v1344_v57 = vsel %vm480_vm0, %v1343_v56, 0.0 }
 0x980   : > { %1345 = vadd.xlane.f32.xlu1 %v1344_v57 }
 0xa0d   : > { %v1346_v59 = vpop.xlane.xlu1 %1345 }
 0xa0e   : > { %v1347_v60 = vmul.f32 0.03125, %v1346_v59 }
 0xa10   : > { %v1348_v61 = vadd.f32 1e-05, %v1347_v60 }
 0xa12   : > { %1841 = vrsqrt.f32 %v1348_v61 }
 0xa1c   : > { %v1842_v62 = vpop.eup %1841 }
 0xa1d   : > { %v1350_v1 = vmul.f32 %v1842_v62, %v1342_v55 }
 0xa1f   : > { %v1358_v3 = vmul.f32 %v1650_v63, %v1350_v1 }
 0xa21   : > { %v1366_v4 = vadd.f32 %v1651_v2, %v1358_v3 }
 0xa23   : > { %v1367_v5 = vpack.c.bf16 %v1366_v4, %v1366_v4 }
 0xa25   : > { %1762 = vmatmul.mubr.msk.bf16.vlgmr.msra.gmra.mrb[16].mxu0 %vm480_vm0, %v1367_v5 }
 0xaf8   : > { %v1428_v16 = vpop.f32.mrb[16].mxu0 }
 0xaf9   : > { %v1429_v17 = vadd.f32 %v1652_v15, %v1428_v16  ;;  %v1763_v18 = vpop.f32.mrb[17].mxu0 }
 0xafa   : > { %v1431_v19 = vpop.f32.mrb[18].mxu0 }
 0xafb   : > { %v1434_v20 = vmul.f32 %v1429_v17, %v1429_v17  ;;  %v1764_v21 = vpop.f32.mrb[19].mxu0 }
 0xafd   : > { %v1435_v23 = vmul.f32 %v1434_v20, %v1429_v17 }
 0xaff   : > { %v1436_v24 = vmul.f32 0.044715, %v1435_v23 }
 0xb01   : > { %v1437_v25 = vadd.f32 %v1436_v24, %v1429_v17 }
 0xb03   : > { %v1438_v26 = vmul.f32 0.7978846, %v1437_v25 }
 0xb05   : > { %1843 = vtanh.f32 %v1438_v26 }
 0xb0f   : > { %v1844_v22 = vpop.eup %1843 }
 0xb10   : > { %v1440_v27 = vadd.f32 1.0, %v1844_v22 }
 0xb12   : > { %v1441_v8 = vmul.f32 0.5, %v1440_v27 }
 0xb14   : > { %v1442_v28 = vmul.f32 %v1441_v8, %v1429_v17 }
 0xb16   : > { %v1443_v29 = vpack.c.bf16 %v1442_v28, %v1442_v28 }
 0xb18   : > { %1782 = vmatmul.mubr.bf16.vlgmr.msra.gmra.mrb[8].mxu1 %v1443_v29 }
 0xbeb   : > { %v1542_v30 = vpop.f32.mrb[8].mxu1 }
 0xbec   : > { %v1548_v32 = vadd.f32 %v1542_v30, %v2073_v51  ;;  %v1783_v33 = vpop.f32.mrb[9].mxu1 }
 0xbed   : > { %v1545_v34 = vpop.f32.mrb[10].mxu1 }
 0xbee   : > { %v1556_v35 = vadd.f32 %v1664_v31, %v1548_v32  ;;  %v1784_v36 = vpop.f32.mrb[11].mxu1 }
 0xbf0   : > { %1557 = vst.msk [vmem:[%s476_s17] sm:$0xff] %vm480_vm0, %v1556_v35 }
 0xbf1 PF: > { %s24_s29 = sadd.s32 1, %s1851_s29  }
 0xbf2   : > { %p21_p4 = scmp.ge.s32.totalorder %s24_s29, 4  }
 0xbf4   :  { %23 = sbr.rel (!%p21_p4) target bundleno = 1 (0x1), region = 109 }

// kernel: forward.5
= control target key start
LH: loop header
LB: loop body
LE: loop exit
PB: predicated region body
PF: predicated region fallthrough
CT: control target
= control target key end

     0   :  { %vm63_vm0 = vcmask 261120   ;;  %v2766_v4 = vmov 0   ;;  %v2767_v18 = vmov 0.0   ;;  %vm2768_vm1 = vmmov 0   ;;  %s2769_s24 = smov 32   ;;  %s2770_s22 = smov 64   ;;  %s3241_s0 = inlined_call_operand.vmem [shape: f32[16,32], index: 0, kind: input, shape index: {}]   ;;  %s3242_s1 = inlined_call_operand.vmem [shape: f32[16,1], index: 1, kind: input, shape index: {}]   ;;  %s3243_s7 = inlined_call_operand.vmem [shape: bf16[32,32], index: 7, kind: input, shape index: {}]   ;;  %s3244_s5 = inlined_call_operand.vmem [shape: f32[1,32], index: 5, kind: input, shape index: {}]   ;;  %s3245_s6 = inlined_call_operand.vmem [shape: f32[1,32], index: 6, kind: input, shape index: {}]   ;;  %s3246_s2 = inlined_call_operand.vmem [shape: f32[16,16], index: 2, kind: input, shape index: {}]   ;;  %s3247_s8 = inlined_call_operand.vmem [shape: f32[1,32], index: 8, kind: input, shape index: {}]   ;;  %s3248_s3 = inlined_call_operand.vmem [shape: f32[16,16], index: 3, kind: input, shape index: {}]   ;;  %s3249_s9 = inlined_call_operand.vmem [shape: bf16[6,96,32], index: 9, kind: input, shape index: {}]   ;;  %s3250_s10 = inlined_call_operand.vmem [shape: f32[6,1,32], index: 10, kind: input, shape index: {}]   ;;  %s3251_s4 = inlined_call_operand.vmem [shape: f32[2,16], index: 4, kind: input, shape index: {}]   ;;  %s3252_s11 = inlined_call_operand.vmem [shape: f32[32,1], index: 11, kind: input, shape index: {}]   ;;  %s3253_s12 = inlined_call_operand.<no memory space> [shape: f32[1,1], index: 12, kind: input, shape index: {}]   ;;  %s3254_s13 = inlined_call_operand.<no memory space> [shape: f32[1,1], index: 13, kind: input, shape index: {}]   ;;  %s3255_s14 = inlined_call_operand.<no memory space> [shape: f32[1,1], index: 14, kind: input, shape index: {}]   ;;  %s3256_s15 = inlined_call_operand.vmem [shape: f32[2,1], index: 15, kind: output, shape index: {0}]   ;;  %s3257_s16 = inlined_call_operand.vmem [shape: f32[2,1], index: 16, kind: output, shape index: {1}]  }
   0x1   :  { %3259 = sst [smem:[#allocation5_spill]] %s3241_s0  ;;  %2659 = vset.pattern.permute.xlu0 %v2766_v4  ;;  %v61_v5 = vld [vmem:[%s3242_s1] sm:$0xff]  ;;  %2660 = vset.pattern.permute.xlu1 %v2766_v4  ;;  %v2873_v16 = vld [vmem:[%s3242_s1 + $0x8] sm:$0xff]  ;;  %vm193_vm2 = vcmask 130048   ;;  %v2725_v56 = vld [vmem:[%s3249_s9 + $0x10] sm:$0xff]   ;;  %vm374_vm3 = vcmask 523264  }
   0x2   :  { %s3260_s23 = sld [smem:[#allocation5_spill]]  ;;  %v2721_v17 = vld [vmem:[%s3243_s7] sm:$0xff]   ;;  %2380 = vmatprep.subr.bf16.mxu0 %v2767_v18  ;;  %v2722_v19 = vld [vmem:[%s3243_s7 + $0x8] sm:$0xff]   ;;  %2384 = vmatprep.mubr.msk.bf16.mxu0 %vm2768_vm1, %v2767_v18  ;;  %v2726_v57 = vld [vmem:[%s3249_s9 + $0x18] sm:$0xff]   ;;  %vm433_vm4 = vcmask 785408   ;;  %vm2100_vm5 = vcmask 1024  }
   0x3   :  { %2381 = vmatpush3.bf16.msra.mxu0 %v2721_v17  ;;  %v2127_v27 = vld [vmem:[%s3244_s5] ss:$0 sm:$0xff]  ;;  %v2924_v51 = vld [vmem:[%s3246_s2 + $0x8] sm:$0xff] }
   0x4   :  { %2382 = vmatprep.subr.bf16.mxu0 %v2767_v18  ;;  %v2128_v31 = vld [vmem:[%s3245_s6] ss:$0 sm:$0xff]  ;;  %v2938_v53 = vld [vmem:[%s3248_s3 + $0x8] sm:$0xff] }
   0x5   :  { %v2905_v41 = vld [vmem:[%s3246_s2] sm:$0xff]  ;;  %v2724_v55 = vld [vmem:[%s3249_s9 + $0x8] sm:$0xff]  }
   0x6   :  { %2392 = vmatprep.mubr.msk.f32.mxu1 %vm193_vm2, %v2905_v41  ;;  %v2129_v42 = vld [vmem:[%s3247_s8] ss:$0 sm:$0xff]  ;;  %v2728_v59 = vld [vmem:[%s3249_s9 + $0x28] sm:$0xff]  }
   0x7   :  { %2383 = vmatpush3.bf16.msra.mxu0 %v2722_v19  ;;  %v2929_v52 = vld [vmem:[%s3248_s3] sm:$0xff] }
   0x8   :  { %v59_v0 = vld [vmem:[%s3260_s23] sm:$0xff]  ;;  %v60_v1 = vld [vmem:[%s3260_s23 + $0x8] sm:$0xff]  ;;  %2402 = vmatprep.subr.bf16.mxu0 %v2767_v18 }
   0x9   :  { %v64_v2 = vsel %vm63_vm0, %v59_v0, 0.0  ;;  %v67_v3 = vsel %vm63_vm0, %v60_v1, 0.0  ;;  %v2723_v54 = vld [vmem:[%s3249_s9] sm:$0xff]  }
   0xa   :  { %65 = vadd.xlane.f32.xlu0 %v64_v2  ;;  %v2727_v58 = vld [vmem:[%s3249_s9 + $0x20] sm:$0xff]  }
   0xe   :  { %68 = vadd.xlane.f32.xlu0 %v67_v3 }
  0x24   :  { %111 = vperm.xlu0 %2659, %v61_v5  }
  0x97   :  { %v66_v6 = vpop.xlane.xlu0 %65 }
  0x98   :  { %v71_v7 = vmul.f32 0.03125, %v66_v6 }
  0x9a   :  { %v73_v8 = vsub.f32 %v59_v0, %v71_v7 }
  0x9b   :  { %v69_v9 = vpop.xlane.xlu0 %68 }
  0x9c   :  { %v72_v10 = vmul.f32 0.03125, %v69_v9  ;;  %v75_v11 = vmul.f32 %v73_v8, %v73_v8 }
  0x9e   :  { %v74_v12 = vsub.f32 %v60_v1, %v72_v10  ;;  %v77_v13 = vsel %vm63_vm0, %v75_v11, 0.0 }
  0x9f   :  { %78 = vadd.xlane.f32.xlu1 %v77_v13 }
  0xa0   :  { %v76_v14 = vmul.f32 %v74_v12, %v74_v12 }
  0xa2   :  { %v80_v15 = vsel %vm63_vm0, %v76_v14, 0.0 }
  0xa3   :  { %81 = vadd.xlane.f32.xlu1 %v80_v15  ;;  %v2893_v35 = vpop.permute.xlu0 %111 }
  0xb4   :  { %116 = vperm.xlu1 %2660, %v2873_v16  }
 0x12c   :  { %v79_v20 = vpop.xlane.xlu1 %78 }
 0x12d   :  { %v83_v21 = vmul.f32 0.03125, %v79_v20 }
 0x12f   :  { %v85_v22 = vadd.f32 1e-05, %v83_v21 }
 0x130   :  { %v82_v23 = vpop.xlane.xlu1 %81 }
 0x131   :  { %2759 = vrsqrt.f32 %v85_v22  ;;  %v84_v24 = vmul.f32 0.03125, %v82_v23 }
 0x133   :  { %v86_v25 = vadd.f32 1e-05, %v84_v24 }
 0x134   :  { %v2895_v36 = vpop.permute.xlu1 %116 }
 0x135   :  { %2761 = vrsqrt.f32 %v86_v25 }
 0x13b   :  { %v2760_v26 = vpop.eup %2759 }
 0x13c   :  { %v89_v28 = vmul.f32 %v2760_v26, %v73_v8 }
 0x13e   :  { %v98_v29 = vmul.f32 %v2127_v27, %v89_v28  ;;  %v2730_v28 = vld [vmem:[%s3249_s9 + $0x38] sm:$0xff]  }
 0x13f   :  { %v2762_v30 = vpop.eup %2761 }
 0x140   :  { %v90_v32 = vmul.f32 %v2762_v30, %v74_v12  ;;  %v107_v33 = vadd.f32 %v2128_v31, %v98_v29  ;;  %v2137_v12 = vld [vmem:[%s3250_s10] ss:$0 sm:$0xff]  ;;  %v2732_v30 = vld [vmem:[%s3249_s9 + $0x48] sm:$0xff]  }
 0x141   :  { %v2731_v29 = vld [vmem:[%s3249_s9 + $0x40] sm:$0xff]  }
 0x142   :  { %v99_v34 = vmul.f32 %v2127_v27, %v90_v32  ;;  %v119_v38 = vmul.f32 %v2893_v35, %v107_v33  ;;  %v2729_v27 = vld [vmem:[%s3249_s9 + $0x30] sm:$0xff]   ;;  %v2734_v32 = vld [vmem:[%s3249_s9 + $0x58] sm:$0xff]  }
 0x144   :  { %v108_v37 = vadd.f32 %v2128_v31, %v99_v34  ;;  %v2733_v31 = vld [vmem:[%s3249_s9 + $0x50] sm:$0xff]  }
 0x146   :  { %v120_v39 = vmul.f32 %v2895_v36, %v108_v37 }
 0x148   :  { %v121_v40 = vpack.c.bf16 %v120_v39, %v119_v38 }
 0x14a   :  { %2385 = vmatmul.mubr.msk.bf16.vlgmr.msra.gmra.mrb[0].mxu0 %vm63_vm0, %v121_v40 }
 0x14b   :  { %2414 = vmatprep.mubr.msk.bf16.mxu0 %vm2768_vm1, %v2767_v18  ;;  %2403 = vmatpush3.bf16.msra.mxu0 %v2723_v54 }
 0x14c   :  { %2404 = vmatprep.subr.bf16.mxu0 %v2767_v18 }
 0x14f   :  { %2405 = vmatpush3.bf16.msra.mxu0 %v2724_v55  ;;  %v2162_v55 = vld [vmem:[%s3250_s10 + $0x1] ss:$0 sm:$0xff] }
 0x150   :  { %2406 = vmatprep.subr.bf16.mxu0 %v2767_v18 }
 0x153   :  { %2407 = vmatpush3.bf16.msra.mxu0 %v2725_v56 }
 0x154   :  { %2408 = vmatprep.subr.bf16.mxu0 %v2767_v18 }
 0x157   :  { %2409 = vmatpush3.bf16.msra.mxu0 %v2726_v57 }
 0x158   :  { %2410 = vmatprep.subr.bf16.mxu0 %v2767_v18 }
 0x15b   :  { %2411 = vmatpush3.bf16.msra.mxu0 %v2727_v58 }
 0x15c   :  { %2412 = vmatprep.subr.bf16.mxu0 %v2767_v18 }
 0x15f   :  { %2413 = vmatpush3.bf16.msra.mxu0 %v2728_v59 }
 0x21d   :  { %v182_v43 = vpop.f32.mrb[0].mxu0 }
 0x21e   :  { %v2386_v44 = vpop.f32.mrb[1].mxu0  ;;  %v2912_v46 = vadd.f32 %v2129_v42, %v182_v43 }
 0x21f   :  { %v185_v45 = vpop.f32.mrb[2].mxu0 }
 0x220   :  { %v2914_v47 = vadd.f32 %v2129_v42, %v185_v45  ;;  %v2387_v48 = vpop.f32.mrb[3].mxu0 }
 0x222   :  { %v2593_v49 = vpack.c.bf16 %v2914_v47, %v2912_v46  ;;  %v2661_v50 = vpack.i.bf16 %v2914_v47, %v2912_v46 }
 0x224   :  { %2662 = vrot.lane.b32.xlu1 %v2661_v50, %s2769_s24  ;;  %2594 = vmatprep.subr.bf16.mxu1 %v2593_v49 }
 0x225   :  { %2596 = vmatpush3.bf16.msra.mxu1 %v2593_v49 }
 0x226   :  { %2598 = vmatprep.subr.bf16.mxu1 %v2593_v49 }
 0x228   :  { %2393 = vmatmul.mubr.msk.f32.vlgmr.msra.gmra.mrb[0].mxu1 %vm193_vm2, %v2924_v51 }
 0x229   :  { %2600 = vmatpush3.bf16.msra.mxu1 %v2593_v49  ;;  %2399 = vmatprep.mubr.msk.f32.mxu1 %vm193_vm2, %v2929_v52 }
 0x22c   :  { %2400 = vmatmul.mubr.msk.f32.vlgmr.msra.gmra.mrb[2].mxu1 %vm193_vm2, %v2938_v53 }
 0x22d   :  { %2422 = vmatprep.mubr.msk.f32.mxu1 %vm193_vm2, %v2905_v41 }
 0x296   :  { %v2663_v1 = vpop.permute.xlu1 %2662 }
 0x297   :  { %v2665_v2 = vunpack.i.h.bf16 %v2663_v1  ;;  %v2664_v3 = vunpack.i.l.bf16 %v2663_v1 }
 0x2fb   :  { %v2394_v60 = vpop.f32.mrb[0].mxu1 }
 0x2fc   :  { %v266_v61 = vpop.f32.mrb[1].mxu1  ;;  %v373_v7 = vsel %vm63_vm0, %v2394_v60, %v2665_v2 }
 0x2fd   :  { %v372_v8 = vsel %vm63_vm0, %v266_v61, %v2664_v3 }
 0x2ff   :  { %v2401_v62 = vpop.f32.mrb[2].mxu1 }
 0x300   :  { %v347_v63 = vpop.f32.mrb[3].mxu1 }
 0x301   :  { %v2666_v0 = vpack.i.bf16 %v2401_v62, %v347_v63 }
 0x303   :  { %2667 = vrot.lane.b32.xlu1 %v2666_v0, %s2770_s22 }
 0x375   :  { %v2668_v4 = vpop.permute.xlu1 %2667 }
 0x376   :  { %v2670_v5 = vunpack.i.h.bf16 %v2668_v4  ;;  %v2669_v6 = vunpack.i.l.bf16 %v2668_v4  ;;  %v2735_v4 = vld [vmem:[%s3249_s9 + $0x60] sm:$0xff]  }
 0x378   :  { %v376_v9 = vsel %vm374_vm3, %v373_v7, %v2670_v5  ;;  %v375_v10 = vsel %vm374_vm3, %v372_v8, %v2669_v6  ;;  %v2736_v5 = vld [vmem:[%s3249_s9 + $0x68] sm:$0xff]   ;;  %v2737_v6 = vld [vmem:[%s3249_s9 + $0x70] sm:$0xff]   ;;  %v2738_v7 = vld [vmem:[%s3249_s9 + $0x78] sm:$0xff]  }
 0x379   :  { %v377_v11 = vpack.c.bf16 %v376_v9, %v375_v10  ;;  %v2739_v8 = vld [vmem:[%s3249_s9 + $0x80] sm:$0xff]   ;;  %v2740_v9 = vld [vmem:[%s3249_s9 + $0x88] sm:$0xff]  }
 0x37b   :  { %2415 = vmatmul.mubr.msk.bf16.vlgmr.msra.gmra.mrb[4].mxu0 %vm433_vm4, %v377_v11 }
 0x37c   :  { %2452 = vmatprep.mubr.msk.f32.mxu0 %vm193_vm2, %v2905_v41 }
 0x44e   :  { %v471_v13 = vpop.f32.mrb[4].mxu0 }
 0x44f   :  { %v472_v14 = vadd.f32 %v2137_v12, %v471_v13  ;;  %v2416_v15 = vpop.f32.mrb[5].mxu0 }
 0x450   :  { %v474_v17 = vpop.f32.mrb[6].mxu0 }
 0x451   :  { %v478_v19 = vmax.f32 %v472_v14, 0.0  ;;  %v475_v20 = vadd.f32 %v2137_v12, %v474_v17  ;;  %v2417_v21 = vpop.f32.mrb[7].mxu0 }
 0x453   :  { %v479_v22 = vmax.f32 %v475_v20, 0.0  ;;  %v480_v23 = vadd.f32 %v478_v19, %v2912_v46 }
 0x455   :  { %v481_v24 = vadd.f32 %v479_v22, %v2914_v47 }
 0x457   :  { %v2671_v25 = vpack.i.bf16 %v481_v24, %v480_v23  ;;  %v2601_v26 = vpack.c.bf16 %v481_v24, %v480_v23 }
 0x459   :  { %2672 = vrot.lane.b32.xlu1 %v2671_v25, %s2769_s24  ;;  %2602 = vmatprep.subr.bf16.mxu1 %v2601_v26 }
 0x45a   :  { %2604 = vmatpush3.bf16.msra.mxu1 %v2601_v26 }
 0x45b   :  { %2606 = vmatprep.subr.bf16.mxu1 %v2601_v26 }
 0x45d   :  { %2423 = vmatmul.mubr.msk.f32.vlgmr.msra.gmra.mrb[4].mxu1 %vm193_vm2, %v2924_v51 }
 0x45e   :  { %2608 = vmatpush3.bf16.msra.mxu1 %v2601_v26  ;;  %2429 = vmatprep.mubr.msk.f32.mxu1 %vm193_vm2, %v2929_v52 }
 0x45f   :  { %2432 = vmatprep.subr.bf16.mxu1 %v2767_v18 }
 0x461   :  { %2430 = vmatmul.mubr.msk.f32.vlgmr.msra.gmra.mrb[6].mxu1 %vm193_vm2, %v2938_v53 }
 0x462   :  { %2444 = vmatprep.mubr.msk.bf16.mxu1 %vm2768_vm1, %v2767_v18  ;;  %2433 = vmatpush3.bf16.msra.mxu1 %v2729_v27 }
 0x463   :  { %2434 = vmatprep.subr.bf16.mxu1 %v2767_v18 }
 0x466   :  { %2435 = vmatpush3.bf16.msra.mxu1 %v2730_v28  ;;  %v2187_v28 = vld [vmem:[%s3250_s10 + $0x2] ss:$0 sm:$0xff] }
 0x467   :  { %2436 = vmatprep.subr.bf16.mxu1 %v2767_v18 }
 0x46a   :  { %2437 = vmatpush3.bf16.msra.mxu1 %v2731_v29 }
 0x46b   :  { %2438 = vmatprep.subr.bf16.mxu1 %v2767_v18 }
 0x46e   :  { %2439 = vmatpush3.bf16.msra.mxu1 %v2732_v30 }
 0x46f   :  { %2440 = vmatprep.subr.bf16.mxu1 %v2767_v18 }
 0x472   :  { %2441 = vmatpush3.bf16.msra.mxu1 %v2733_v31 }
 0x473   :  { %2442 = vmatprep.subr.bf16.mxu1 %v2767_v18 }
 0x476   :  { %2443 = vmatpush3.bf16.msra.mxu1 %v2734_v32 }
 0x477   :  { %2462 = vmatprep.subr.bf16.mxu1 %v2767_v18 }
 0x4cb   :  { %v2673_v40 = vpop.permute.xlu1 %2672 }
 0x4cc   :  { %v2675_v42 = vunpack.i.h.bf16 %v2673_v40  ;;  %v2674_v43 = vunpack.i.l.bf16 %v2673_v40 }
 0x530   :  { %v2424_v33 = vpop.f32.mrb[4].mxu1 }
 0x531   :  { %v548_v34 = vpop.f32.mrb[5].mxu1  ;;  %v649_v47 = vsel %vm63_vm0, %v2424_v33, %v2675_v42 }
 0x532   :  { %v648_v48 = vsel %vm63_vm0, %v548_v34, %v2674_v43 }
 0x534   :  { %v2431_v37 = vpop.f32.mrb[6].mxu1 }
 0x535   :  { %v623_v38 = vpop.f32.mrb[7].mxu1 }
 0x536   :  { %v2676_v39 = vpack.i.bf16 %v2431_v37, %v623_v38 }
 0x538   :  { %2677 = vrot.lane.b32.xlu1 %v2676_v39, %s2770_s22 }
 0x5aa   :  { %v2678_v44 = vpop.permute.xlu1 %2677 }
 0x5ab   :  { %v2680_v45 = vunpack.i.h.bf16 %v2678_v44  ;;  %v2679_v46 = vunpack.i.l.bf16 %v2678_v44  ;;  %v2741_v44 = vld [vmem:[%s3249_s9 + $0x90] sm:$0xff]  }
 0x5ad   :  { %v651_v49 = vsel %vm374_vm3, %v649_v47, %v2680_v45  ;;  %v650_v50 = vsel %vm374_vm3, %v648_v48, %v2679_v46  ;;  %v2742_v45 = vld [vmem:[%s3249_s9 + $0x98] sm:$0xff]   ;;  %v2743_v46 = vld [vmem:[%s3249_s9 + $0xa0] sm:$0xff]   ;;  %v2744_v47 = vld [vmem:[%s3249_s9 + $0xa8] sm:$0xff]  }
 0x5ae   :  { %v652_v54 = vpack.c.bf16 %v651_v49, %v650_v50  ;;  %v2745_v48 = vld [vmem:[%s3249_s9 + $0xb0] sm:$0xff]   ;;  %v2746_v49 = vld [vmem:[%s3249_s9 + $0xb8] sm:$0xff]  }
 0x5b0   :  { %2445 = vmatmul.mubr.msk.bf16.vlgmr.msra.gmra.mrb[8].mxu1 %vm433_vm4, %v652_v54 }
 0x5b1   :  { %2474 = vmatprep.mubr.msk.bf16.mxu1 %vm2768_vm1, %v2767_v18  ;;  %2463 = vmatpush3.bf16.msra.mxu1 %v2735_v4 }
 0x5b2   :  { %2464 = vmatprep.subr.bf16.mxu1 %v2767_v18 }
 0x5b5   :  { %2465 = vmatpush3.bf16.msra.mxu1 %v2736_v5  ;;  %v2212_v5 = vld [vmem:[%s3250_s10 + $0x3] ss:$0 sm:$0xff] }
 0x5b6   :  { %2466 = vmatprep.subr.bf16.mxu1 %v2767_v18 }
 0x5b9   :  { %2467 = vmatpush3.bf16.msra.mxu1 %v2737_v6 }
 0x5ba   :  { %2468 = vmatprep.subr.bf16.mxu1 %v2767_v18 }
 0x5bd   :  { %2469 = vmatpush3.bf16.msra.mxu1 %v2738_v7 }
 0x5be   :  { %2470 = vmatprep.subr.bf16.mxu1 %v2767_v18 }
 0x5c1   :  { %2471 = vmatpush3.bf16.msra.mxu1 %v2739_v8 }
 0x5c2   :  { %2472 = vmatprep.subr.bf16.mxu1 %v2767_v18 }
 0x5c5   :  { %2473 = vmatpush3.bf16.msra.mxu1 %v2740_v9 }
 0x683   :  { %v747_v56 = vpop.f32.mrb[8].mxu1 }
 0x684   :  { %v748_v57 = vadd.f32 %v2162_v55, %v747_v56  ;;  %v2446_v58 = vpop.f32.mrb[9].mxu1 }
 0x685   :  { %v750_v59 = vpop.f32.mrb[10].mxu1 }
 0x686   :  { %v754_v60 = vmax.f32 %v748_v57, 0.0  ;;  %v751_v61 = vadd.f32 %v2162_v55, %v750_v59  ;;  %v2447_v62 = vpop.f32.mrb[11].mxu1 }
 0x688   :  { %v755_v63 = vmax.f32 %v751_v61, 0.0  ;;  %v756_v0 = vadd.f32 %v754_v60, %v480_v23 }
 0x68a   :  { %v757_v1 = vadd.f32 %v755_v63, %v481_v24 }
 0x68c   :  { %v2681_v2 = vpack.i.bf16 %v757_v1, %v756_v0  ;;  %v2609_v3 = vpack.c.bf16 %v757_v1, %v756_v0 }
 0x68e   :  { %2682 = vrot.lane.b32.xlu1 %v2681_v2, %s2769_s24  ;;  %2610 = vmatprep.subr.bf16.mxu0 %v2609_v3 }
 0x68f   :  { %2612 = vmatpush3.bf16.msra.mxu0 %v2609_v3 }
 0x690   :  { %2614 = vmatprep.subr.bf16.mxu0 %v2609_v3 }
 0x692   :  { %2453 = vmatmul.mubr.msk.f32.vlgmr.msra.gmra.mrb[8].mxu0 %vm193_vm2, %v2924_v51 }
 0x693   :  { %2616 = vmatpush3.bf16.msra.mxu0 %v2609_v3  ;;  %2459 = vmatprep.mubr.msk.f32.mxu0 %vm193_vm2, %v2929_v52 }
 0x696   :  { %2460 = vmatmul.mubr.msk.f32.vlgmr.msra.gmra.mrb[10].mxu0 %vm193_vm2, %v2938_v53 }
 0x697   :  { %2482 = vmatprep.mubr.msk.f32.mxu0 %vm193_vm2, %v2905_v41 }
 0x700   :  { %v2683_v15 = vpop.permute.xlu1 %2682 }
 0x701   :  { %v2685_v17 = vunpack.i.h.bf16 %v2683_v15  ;;  %v2684_v19 = vunpack.i.l.bf16 %v2683_v15 }
 0x765   :  { %v2454_v10 = vpop.f32.mrb[8].mxu0 }
 0x766   :  { %v824_v11 = vpop.f32.mrb[9].mxu0  ;;  %v925_v23 = vsel %vm63_vm0, %v2454_v10, %v2685_v17 }
 0x767   :  { %v924_v24 = vsel %vm63_vm0, %v824_v11, %v2684_v19 }
 0x769   :  { %v2461_v12 = vpop.f32.mrb[10].mxu0 }
 0x76a   :  { %v899_v13 = vpop.f32.mrb[11].mxu0 }
 0x76b   :  { %v2686_v14 = vpack.i.bf16 %v2461_v12, %v899_v13 }
 0x76d   :  { %2687 = vrot.lane.b32.xlu1 %v2686_v14, %s2770_s22 }
 0x7df   :  { %v2688_v20 = vpop.permute.xlu1 %2687 }
 0x7e0   :  { %v2690_v21 = vunpack.i.h.bf16 %v2688_v20  ;;  %v2689_v22 = vunpack.i.l.bf16 %v2688_v20  ;;  %v2747_v20 = vld [vmem:[%s3249_s9 + $0xc0] sm:$0xff]  }
 0x7e2   :  { %v927_v25 = vsel %vm374_vm3, %v925_v23, %v2690_v21  ;;  %v926_v26 = vsel %vm374_vm3, %v924_v24, %v2689_v22  ;;  %v2748_v21 = vld [vmem:[%s3249_s9 + $0xc8] sm:$0xff]   ;;  %v2749_v22 = vld [vmem:[%s3249_s9 + $0xd0] sm:$0xff]   ;;  %v2751_v23 = vld [vmem:[%s3249_s9 + $0xe0] sm:$0xff]  }
 0x7e3   :  { %v928_v27 = vpack.c.bf16 %v927_v25, %v926_v26  ;;  %v2752_v24 = vld [vmem:[%s3249_s9 + $0xe8] sm:$0xff]  }
 0x7e5   :  { %2475 = vmatmul.mubr.msk.bf16.vlgmr.msra.gmra.mrb[12].mxu1 %vm433_vm4, %v928_v27 }
 0x7e6   :  { %2512 = vmatprep.mubr.msk.f32.mxu1 %vm193_vm2, %v2905_v41 }
 0x8b8   :  { %v1023_v29 = vpop.f32.mrb[12].mxu1 }
 0x8b9   :  { %v1024_v30 = vadd.f32 %v2187_v28, %v1023_v29  ;;  %v2476_v31 = vpop.f32.mrb[13].mxu1 }
 0x8ba   :  { %v1026_v32 = vpop.f32.mrb[14].mxu1 }
 0x8bb   :  { %v1030_v33 = vmax.f32 %v1024_v30, 0.0  ;;  %v1027_v34 = vadd.f32 %v2187_v28, %v1026_v32  ;;  %v2477_v37 = vpop.f32.mrb[15].mxu1 }
 0x8bd   :  { %v1031_v38 = vmax.f32 %v1027_v34, 0.0  ;;  %v1032_v39 = vadd.f32 %v1030_v33, %v756_v0 }
 0x8bf   :  { %v1033_v40 = vadd.f32 %v1031_v38, %v757_v1 }
 0x8c1   :  { %v2691_v42 = vpack.i.bf16 %v1033_v40, %v1032_v39  ;;  %v2617_v43 = vpack.c.bf16 %v1033_v40, %v1032_v39 }
 0x8c3   :  { %2692 = vrot.lane.b32.xlu1 %v2691_v42, %s2769_s24  ;;  %2618 = vmatprep.subr.bf16.mxu0 %v2617_v43 }
 0x8c4   :  { %2620 = vmatpush3.bf16.msra.mxu0 %v2617_v43 }
 0x8c5   :  { %2622 = vmatprep.subr.bf16.mxu0 %v2617_v43 }
 0x8c7   :  { %2483 = vmatmul.mubr.msk.f32.vlgmr.msra.gmra.mrb[12].mxu0 %vm193_vm2, %v2924_v51 }
 0x8c8   :  { %2624 = vmatpush3.bf16.msra.mxu0 %v2617_v43  ;;  %2489 = vmatprep.mubr.msk.f32.mxu0 %vm193_vm2, %v2929_v52 }
 0x8c9   :  { %2492 = vmatprep.subr.bf16.mxu0 %v2767_v18 }
 0x8cb   :  { %2490 = vmatmul.mubr.msk.f32.vlgmr.msra.gmra.mrb[14].mxu0 %vm193_vm2, %v2938_v53 }
 0x8cc   :  { %2504 = vmatprep.mubr.msk.bf16.mxu0 %vm2768_vm1, %v2767_v18  ;;  %2493 = vmatpush3.bf16.msra.mxu0 %v2741_v44  ;;  %v2237_v44 = vld [vmem:[%s3250_s10 + $0x4] ss:$0 sm:$0xff] }
 0x8cd   :  { %2494 = vmatprep.subr.bf16.mxu0 %v2767_v18 }
 0x8d0   :  { %2495 = vmatpush3.bf16.msra.mxu0 %v2742_v45 }
 0x8d1   :  { %2496 = vmatprep.subr.bf16.mxu0 %v2767_v18 }
 0x8d4   :  { %2497 = vmatpush3.bf16.msra.mxu0 %v2743_v46 }
 0x8d5   :  { %2498 = vmatprep.subr.bf16.mxu0 %v2767_v18 }
 0x8d8   :  { %2499 = vmatpush3.bf16.msra.mxu0 %v2744_v47 }
 0x8d9   :  { %2500 = vmatprep.subr.bf16.mxu0 %v2767_v18 }
 0x8dc   :  { %2501 = vmatpush3.bf16.msra.mxu0 %v2745_v48 }
 0x8dd   :  { %2502 = vmatprep.subr.bf16.mxu0 %v2767_v18 }
 0x8e0   :  { %2503 = vmatpush3.bf16.msra.mxu0 %v2746_v49 }
 0x8e1   :  { %2522 = vmatprep.subr.bf16.mxu0 %v2767_v18 }
 0x935   :  { %v2693_v58 = vpop.permute.xlu1 %2692 }
 0x936   :  { %v2695_v59 = vunpack.i.h.bf16 %v2693_v58  ;;  %v2694_v60 = vunpack.i.l.bf16 %v2693_v58 }
 0x99a   :  { %v2484_v50 = vpop.f32.mrb[12].mxu0 }
 0x99b   :  { %v1100_v54 = vpop.f32.mrb[13].mxu0  ;;  %v1201_v0 = vsel %vm63_vm0, %v2484_v50, %v2695_v59 }
 0x99c   :  { %v1200_v1 = vsel %vm63_vm0, %v1100_v54, %v2694_v60  ;;  %v2753_v60 = vld [vmem:[%s3249_s9 + $0xf0] sm:$0xff]  }
 0x99e   :  { %v2491_v55 = vpop.f32.mrb[14].mxu0 }
 0x99f   :  { %v1175_v56 = vpop.f32.mrb[15].mxu0 }
 0x9a0   :  { %v2696_v57 = vpack.i.bf16 %v2491_v55, %v1175_v56 }
 0x9a2   :  { %2697 = vrot.lane.b32.xlu0 %v2696_v57, %s2770_s22 }
 0xa14   :  { %v2698_v61 = vpop.permute.xlu0 %2697 }
 0xa15   :  { %v2700_v62 = vunpack.i.h.bf16 %v2698_v61  ;;  %v2699_v63 = vunpack.i.l.bf16 %v2698_v61  ;;  %v2757_v61 = vld [vmem:[%s3249_s9 + $0x110] sm:$0xff]  }
 0xa17   :  { %v1203_v2 = vsel %vm374_vm3, %v1201_v0, %v2700_v62  ;;  %v1202_v3 = vsel %vm374_vm3, %v1200_v1, %v2699_v63  ;;  %v2758_v62 = vld [vmem:[%s3249_s9 + $0x118] sm:$0xff]  }
 0xa18   :  { %v1204_v4 = vpack.c.bf16 %v1203_v2, %v1202_v3 }
 0xa1a   :  { %2505 = vmatmul.mubr.msk.bf16.vlgmr.msra.gmra.mrb[16].mxu0 %vm433_vm4, %v1204_v4 }
 0xa1b   :  { %2534 = vmatprep.mubr.msk.bf16.mxu0 %vm2768_vm1, %v2767_v18  ;;  %2523 = vmatpush3.bf16.msra.mxu0 %v2747_v20 }
 0xa1c   :  { %2524 = vmatprep.subr.bf16.mxu0 %v2767_v18 }
 0xa1f   :  { %2525 = vmatpush3.bf16.msra.mxu0 %v2748_v21 }
 0xa20   :  { %2526 = vmatprep.subr.bf16.mxu0 %v2767_v18 }
 0xa23   :  { %2527 = vmatpush3.bf16.msra.mxu0 %v2749_v22 }
 0xa24   :  { %2528 = vmatprep.subr.bf16.mxu0 %v2767_v18 }
 0xaed   :  { %v1299_v6 = vpop.f32.mrb[16].mxu0 }
 0xaee   :  { %v1300_v7 = vadd.f32 %v2212_v5, %v1299_v6  ;;  %v2506_v8 = vpop.f32.mrb[17].mxu0 }
 0xaef   :  { %v1302_v9 = vpop.f32.mrb[18].mxu0 }
 0xaf0   :  { %v1306_v10 = vmax.f32 %v1300_v7, 0.0  ;;  %v1303_v11 = vadd.f32 %v2212_v5, %v1302_v9  ;;  %v2507_v12 = vpop.f32.mrb[19].mxu0 }
 0xaf2   :  { %v1307_v13 = vmax.f32 %v1303_v11, 0.0  ;;  %v1308_v14 = vadd.f32 %v1306_v10, %v1032_v39 }
 0xaf4   :  { %v1309_v15 = vadd.f32 %v1307_v13, %v1033_v40 }
 0xaf6   :  { %v2701_v17 = vpack.i.bf16 %v1309_v15, %v1308_v14  ;;  %v2625_v19 = vpack.c.bf16 %v1309_v15, %v1308_v14 }
 0xaf8   :  { %2702 = vrot.lane.b32.xlu1 %v2701_v17, %s2769_s24  ;;  %2626 = vmatprep.subr.bf16.mxu1 %v2625_v19  ;;  %v2262_v17 = vld [vmem:[%s3250_s10 + $0x5] ss:$0 sm:$0xff] }
 0xaf9   :  { %2628 = vmatpush3.bf16.msra.mxu1 %v2625_v19 }
 0xafa   :  { %2630 = vmatprep.subr.bf16.mxu1 %v2625_v19 }
 0xafc   :  { %2513 = vmatmul.mubr.msk.f32.vlgmr.msra.gmra.mrb[16].mxu1 %vm193_vm2, %v2924_v51 }
 0xafd   :  { %2632 = vmatpush3.bf16.msra.mxu1 %v2625_v19  ;;  %2519 = vmatprep.mubr.msk.f32.mxu1 %vm193_vm2, %v2929_v52 }
 0xb00   :  { %2520 = vmatmul.mubr.msk.f32.vlgmr.msra.gmra.mrb[18].mxu1 %vm193_vm2, %v2938_v53 }
 0xb01   :  { %2542 = vmatprep.mubr.msk.f32.mxu1 %vm193_vm2, %v2905_v41  ;;  %v2750_v41 = vld [vmem:[%s3249_s9 + $0xd8] sm:$0xff]  }
 0xb02   :  { %2529 = vmatpush3.bf16.msra.mxu0 %v2750_v41 }
 0xb03   :  { %2530 = vmatprep.subr.bf16.mxu0 %v2767_v18 }
 0xb06   :  { %2531 = vmatpush3.bf16.msra.mxu0 %v2751_v23 }
 0xb07   :  { %2532 = vmatprep.subr.bf16.mxu0 %v2767_v18 }
 0xb0a   :  { %2533 = vmatpush3.bf16.msra.mxu0 %v2752_v24 }
 0xb6a   :  { %v2703_v30 = vpop.permute.xlu1 %2702 }
 0xb6b   :  { %v2705_v31 = vunpack.i.h.bf16 %v2703_v30  ;;  %v2704_v32 = vunpack.i.l.bf16 %v2703_v30 }
 0xbcf   :  { %v2514_v25 = vpop.f32.mrb[16].mxu1 }
 0xbd0   :  { %v1376_v26 = vpop.f32.mrb[17].mxu1  ;;  %v1477_v38 = vsel %vm63_vm0, %v2514_v25, %v2705_v31  ;;  %v2765_v31 = vld [vmem:[%s3242_s1] sm:$0xff] }
 0xbd1   :  { %v1476_v39 = vsel %vm63_vm0, %v1376_v26, %v2704_v32  ;;  %v2645_v32 = vpack.c.bf16 %v2873_v16, %v2765_v31  ;;  %v2017_v16 = vld [vmem:[%s3252_s11 + $0x8] sm:$0xff] }
 0xbd3   :  { %v2521_v27 = vpop.f32.mrb[18].mxu1 }
 0xbd4   :  { %v1451_v28 = vpop.f32.mrb[19].mxu1 }
 0xbd5   :  { %v2706_v29 = vpack.i.bf16 %v2521_v27, %v1451_v28 }
 0xbd7   :  { %2707 = vrot.lane.b32.xlu0 %v2706_v29, %s2770_s22 }
 0xc49   :  { %v2708_v33 = vpop.permute.xlu0 %2707 }
 0xc4a   :  { %v2710_v34 = vunpack.i.h.bf16 %v2708_v33  ;;  %v2709_v37 = vunpack.i.l.bf16 %v2708_v33  ;;  %v1864_v33 = vld [vmem:[%s3251_s4] sm:$0x3] }
 0xc4c   :  { %v1479_v40 = vsel %vm374_vm3, %v1477_v38, %v2710_v34  ;;  %v1478_v42 = vsel %vm374_vm3, %v1476_v39, %v2709_v37  ;;  %v2019_v37 = vld [vmem:[%s3252_s11 + $0x18] sm:$0xff] }
 0xc4d   :  { %v1480_v43 = vpack.c.bf16 %v1479_v40, %v1478_v42 }
 0xc4f   :  { %2535 = vmatmul.mubr.msk.bf16.vlgmr.msra.gmra.mrb[20].mxu0 %vm433_vm4, %v1480_v43 }
 0xc50   :  { %2572 = vmatprep.mubr.msk.f32.mxu0 %vm2768_vm1, %v2767_v18 }
 0xd22   :  { %v1575_v45 = vpop.f32.mrb[20].mxu0 }
 0xd23   :  { %v1576_v46 = vadd.f32 %v2237_v44, %v1575_v45  ;;  %v2536_v47 = vpop.f32.mrb[21].mxu0  ;;  %v22_v45 = vstv %s3253_s12 }
 0xd24   :  { %v1578_v48 = vpop.f32.mrb[22].mxu0  ;;  %v26_v47 = vstv %s3255_s14  ;;  %23 = vst [vmem:[#allocation2] sm:$0x1] %v22_v45 }
 0xd25   :  { %v1582_v49 = vmax.f32 %v1576_v46, 0.0  ;;  %v1579_v50 = vadd.f32 %v2237_v44, %v1578_v48  ;;  %v2537_v54 = vpop.f32.mrb[23].mxu0  ;;  %v24_v46 = vstv %s3254_s13  ;;  %27 = vst [vmem:[#allocation4] sm:$0x1] %v26_v47 }
 0xd26   :  { %25 = vst [vmem:[#allocation3] sm:$0x1] %v24_v46 }
 0xd27   :  { %v1583_v55 = vmax.f32 %v1579_v50, 0.0  ;;  %v1584_v56 = vadd.f32 %v1582_v49, %v1308_v14 }
 0xd29   :  { %v1585_v57 = vadd.f32 %v1583_v55, %v1309_v15  ;;  %v2771_v15 = vmov 0.0|0.0  }
 0xd2a   :  { %2641 = vmatprep.subr.bf16.mxu0 %v2771_v15 }
 0xd2b   :  { %v2711_v58 = vpack.i.bf16 %v1585_v57, %v1584_v56  ;;  %v2633_v59 = vpack.c.bf16 %v1585_v57, %v1584_v56  ;;  %v2272_v50 = vld [vmem:[#allocation2] ss:$0 sm:$0xff] }
 0xd2d   :  { %2712 = vrot.lane.b32.xlu1 %v2711_v58, %s2769_s24  ;;  %2634 = vmatprep.subr.bf16.mxu1 %v2633_v59  ;;  %v2274_v55 = vld [vmem:[#allocation3] ss:$0 sm:$0xff]  ;;  %v2275_v58 = vld [vmem:[#allocation4] ss:$0 sm:$0xff] }
 0xd2e   :  { %2636 = vmatpush3.bf16.msra.mxu1 %v2633_v59 }
 0xd2f   :  { %2638 = vmatprep.subr.bf16.mxu1 %v2633_v59 }
 0xd31   :  { %2543 = vmatmul.mubr.msk.f32.vlgmr.msra.gmra.mrb[20].mxu1 %vm193_vm2, %v2924_v51  ;;  %v2754_v51 = vld [vmem:[%s3249_s9 + $0xf8] sm:$0xff]  }
 0xd32   :  { %2640 = vmatpush3.bf16.msra.mxu1 %v2633_v59  ;;  %2549 = vmatprep.mubr.msk.f32.mxu1 %vm193_vm2, %v2929_v52  ;;  %v2755_v52 = vld [vmem:[%s3249_s9 + $0x100] sm:$0xff]  }
 0xd33   :  { %2552 = vmatprep.subr.bf16.mxu1 %v2767_v18 }
 0xd35   :  { %2550 = vmatmul.mubr.msk.f32.vlgmr.msra.gmra.mrb[22].mxu1 %vm193_vm2, %v2938_v53  ;;  %v2756_v53 = vld [vmem:[%s3249_s9 + $0x108] sm:$0xff]  }
 0xd36   :  { %2564 = vmatprep.mubr.msk.bf16.mxu1 %vm2768_vm1, %v2767_v18  ;;  %2553 = vmatpush3.bf16.msra.mxu1 %v2753_v60 }
 0xd37   :  { %2554 = vmatprep.subr.bf16.mxu1 %v2767_v18 }
 0xd3a   :  { %2555 = vmatpush3.bf16.msra.mxu1 %v2754_v51 }
 0xd3b   :  { %2556 = vmatprep.subr.bf16.mxu1 %v2767_v18 }
 0xd3e   :  { %2557 = vmatpush3.bf16.msra.mxu1 %v2755_v52 }
 0xd3f   :  { %2558 = vmatprep.subr.bf16.mxu1 %v2767_v18 }
 0xd42   :  { %2559 = vmatpush3.bf16.msra.mxu1 %v2756_v53 }
 0xd43   :  { %2560 = vmatprep.subr.bf16.mxu1 %v2767_v18 }
 0xd46   :  { %2561 = vmatpush3.bf16.msra.mxu1 %v2757_v61 }
 0xd47   :  { %2562 = vmatprep.subr.bf16.mxu1 %v2767_v18 }
 0xd4a   :  { %2563 = vmatpush3.bf16.msra.mxu1 %v2758_v62 }
 0xd4b   :  { %2647 = vmatprep.subr.bf16.mxu1 %v2771_v15 }
 0xd9f   :  { %v2713_v4 = vpop.permute.xlu1 %2712 }
 0xda0   :  { %v2715_v5 = vunpack.i.h.bf16 %v2713_v4  ;;  %v2714_v6 = vunpack.i.l.bf16 %v2713_v4 }
 0xe04   :  { %v2544_v63 = vpop.f32.mrb[20].mxu1 }
 0xe05   :  { %v1652_v0 = vpop.f32.mrb[21].mxu1  ;;  %v1753_v10 = vsel %vm63_vm0, %v2544_v63, %v2715_v5 }
 0xe06   :  { %v1752_v11 = vsel %vm63_vm0, %v1652_v0, %v2714_v6 }
 0xe08   :  { %v2551_v1 = vpop.f32.mrb[22].mxu1 }
 0xe09   :  { %v1727_v2 = vpop.f32.mrb[23].mxu1 }
 0xe0a   :  { %v2716_v3 = vpack.i.bf16 %v2551_v1, %v1727_v2 }
 0xe0c   :  { %2717 = vrot.lane.b32.xlu0 %v2716_v3, %s2770_s22 }
 0xe7e   :  { %v2718_v7 = vpop.permute.xlu0 %2717 }
 0xe7f   :  { %v2720_v8 = vunpack.i.h.bf16 %v2718_v7  ;;  %v2719_v9 = vunpack.i.l.bf16 %v2718_v7 }
 0xe81   :  { %v1755_v12 = vsel %vm374_vm3, %v1753_v10, %v2720_v8  ;;  %v1754_v13 = vsel %vm374_vm3, %v1752_v11, %v2719_v9 }
 0xe82   :  { %v1756_v14 = vpack.c.bf16 %v1755_v12, %v1754_v13 }
 0xe84   :  { %2565 = vmatmul.mubr.msk.bf16.vlgmr.msra.gmra.mrb[24].mxu1 %vm433_vm4, %v1756_v14 }
 0xe85   :  { %2590 = vmatprep.mubr.msk.f32.mxu1 %vm2768_vm1, %v2767_v18 }
 0xf57   :  { %v1851_v19 = vpop.f32.mrb[24].mxu1 }
 0xf58   :  { %v1852_v20 = vadd.f32 %v2262_v17, %v1851_v19  ;;  %v2566_v21 = vpop.f32.mrb[25].mxu1 }
 0xf59   :  { %v1854_v22 = vpop.f32.mrb[26].mxu1 }
 0xf5a   :  { %v1858_v41 = vmax.f32 %v1852_v20, 0.0  ;;  %v1855_v23 = vadd.f32 %v2262_v17, %v1854_v22  ;;  %v2567_v24 = vpop.f32.mrb[27].mxu1 }
 0xf5c   :  { %v1860_v25 = vadd.f32 %v1858_v41, %v1584_v56  ;;  %v1859_v26 = vmax.f32 %v1855_v23, 0.0 }
 0xf5e   :  { %v1861_v27 = vadd.f32 %v1859_v26, %v1585_v57  ;;  %v1862_v28 = vmul.f32 %v1860_v25, %v2893_v35  ;;  %v2016_v35 = vld [vmem:[%s3252_s11] sm:$0xff] }
 0xf5f   :  { %v2648_v34 = vpack.c.bf16 %v2017_v16, %v2016_v35 }
 0xf60   :  { %v1863_v29 = vmul.f32 %v1861_v27, %v2895_v36  ;;  %v2018_v36 = vld [vmem:[%s3252_s11 + $0x10] sm:$0xff] }
 0xf61   :  { %2649 = vmatpush3.bf16.msra.mxu1 %v2648_v34 }
 0xf62   :  { %v2642_v30 = vpack.c.bf16 %v1863_v29, %v1862_v28  ;;  %2650 = vmatprep.subr.bf16.mxu1 %v2771_v15 }
 0xf64   :  { %2643 = vmatpush3.bf16.msra.mxu0 %v2642_v30 }
 0xf65   :  { %2644 = vmatprep.subr.bf16.mxu0 %v2771_v15 }
 0xf67   :  { %2573 = vmatmul.mubr.msk.f32.vlgmr.msra.gmra.mrb[24].mxu0 %vm193_vm2, %v1864_v33 }
 0xf68   :  { %2646 = vmatpush3.bf16.msra.mxu0 %v2645_v32  ;;  %2579 = vmatprep.mubr.msk.f32.mxu0 %vm2768_vm1, %v2767_v18  ;;  %v2651_v18 = vpack.c.bf16 %v2019_v37, %v2018_v36 }
 0xf6a   :  { %2652 = vmatpush3.bf16.msra.mxu1 %v2651_v18 }
 0xf6b   :  { %2580 = vmatmul.mubr.msk.f32.vlgmr.msra.gmra.mrb[26].mxu0 %vm193_vm2, %v1864_v33 }
0x103a   :  { %v1934_v38 = vpop.f32.mrb[24].mxu0 }
0x103b   :  { %v2574_v39 = vpop.f32.mrb[25].mxu0 }
0x103e   :  { %v2004_v40 = vpop.f32.mrb[26].mxu0 }
0x103f   :  { %v2008_v42 = vmax.f32 %v2004_v40, 1.0  ;;  %v2581_v43 = vpop.f32.mrb[27].mxu0 }
0x1041   :  { %2763 = vrcp.f32 %v2008_v42 }
0x104b   :  { %v2764_v44 = vpop.eup %2763 }
0x104c   :  { %2012 = vperm.xlu1 %2660, %v2764_v44  }
0x10cb   :  { %v2013_v48 = vpop.permute.xlu1 %2012 }
0x10cc   :  { %v2015_v49 = vmul.f32 %v2013_v48, %v1934_v38 }
0x10ce   :  { %2591 = vmatmul.mubr.msk.f32.vlgmr.msra.gmra.mrb[28].mxu1 %vm63_vm0, %v2015_v49 }
0x11a1   :  { %v2096_v54 = vpop.f32.mrb[28].mxu1 }
0x11a2   :  { %v2097_v56 = vadd.f32 %v2272_v50, %v2096_v54  ;;  %v2592_v57 = vpop.f32.mrb[29].mxu1 }
0x11a4   :  { %2101 = vst.msk [vmem:[%s3256_s15] sm:$0x3] %vm2100_vm5, %v2097_v56  ;;  %v2109_v59 = vmul.f32 %v2274_v55, %v2097_v56 }
0x11a6   :  { %v2117_v60 = vadd.f32 %v2275_v58, %v2109_v59 }
0x11a8   :  { %2118 = vst.msk [vmem:[%s3257_s16] sm:$0x3] %vm2100_vm5, %v2117_v60 }

</bundles_post_ra>
